<compile_context>
chip_gen: v6e
topology: v6e:2x2x1
jax: 0.10.0
libtpu: 0.0.40
codegen_flags: <defaults>
</compile_context>

<pallas_src>
import numpy as np
import jax
import jax.numpy as jnp
from jax import lax
from jax.experimental import pallas as pl
from jax.experimental.pallas import tpu as pltpu


def _cfc_chunk_kernel(xp_ref, h0_ref, wbh_ref, wh_ref, bh_ref, y_ref, h_scr):
    """Process one chunk of TT timesteps for one batch shard.

    xp_ref : (TT, Bs, BUp)  precomputed 0.666*(x_t @ W_bb_x + b_bb)
    h0_ref : (Bs, H)        initial hidden state (this batch shard)
    wbh_ref: (H, BUp)       0.666 * hidden part of the backbone weight
    wh_ref : (BUp, 3H)      1.7159 * fused [W_ff1 | W_ff2 | W_ta+W_tb]
    bh_ref : (1, 3H)        fused head biases [b_ff1 | b_ff2 | b_ta+b_tb]
    y_ref  : (TT, Bs, H)    output sequence chunk (h at every step)
    h_scr  : (Bs, H)        VMEM scratch carrying h across chunks
    """
    c = pl.program_id(1)  # chunk index (time axis, sequential / "arbitrary")

    @pl.when(c == 0)
    def _():
        h_scr[...] = h0_ref[...]

    TT = xp_ref.shape[0]
    Bs = h_scr.shape[0]
    H = h_scr.shape[1]

    # Loop-invariant loads / broadcasts hoisted out of the timestep loop
    # (JAX does not CSE broadcast_in_dim).
    wbh = wbh_ref[...]                                   # (H, BUp)
    wh = wh_ref[...]                                     # (BUp, 3H)
    bh = jnp.broadcast_to(bh_ref[...], (Bs, 3 * H))      # (Bs, 3H)
    mxu_dt = wbh.dtype

    def step(t, h):
        # Backbone: precomputed input part + recurrent part (0.666 folded in).
        pre = xp_ref[t] + jnp.dot(h.astype(mxu_dt), wbh,
                                  preferred_element_type=jnp.float32)
        bb = jnp.tanh(pre)                               # 1.7159 folded into wh

        # Single fused head projection: [ff1 | ff2 | t] (ts == 1.0 fused).
        z = jnp.dot(bb.astype(mxu_dt), wh,
                    preferred_element_type=jnp.float32) + bh      # (Bs, 3H)
        ff = jnp.tanh(z[:, 0:2 * H])                     # one EUP slab for ff1|ff2
        ff1 = ff[:, 0:H]
        ff2 = ff[:, H:2 * H]
        t_interp = jax.nn.sigmoid(z[:, 2 * H:3 * H])

        h_new = ff1 + t_interp * (ff2 - ff1)             # == ff1*(1-t) + t*ff2

        # NOTE: H < 128 at demo sizes -> masked store; use H % 128 == 0 (or a
        # repacked output layout) at production sizes for lane-dense stores.
        y_ref[t] = h_new.astype(y_ref.dtype)
        return h_new

    h_scr[...] = lax.fori_loop(0, TT, step, h_scr[...], unroll=True)


def cfc_forward(x_btc, h0, params, *, tt=None, batch_shards=1,
                mxu_dtype=jnp.float32):
    """x_btc: (B, T, C) batch-first input. Returns (readout (B, T, H), hn (B, H))."""
    B, T, C = x_btc.shape
    H = h0.shape[1]
    BU = params["W_bb_x"].shape[1]

    # ---- static shape derivation / tile alignment -------------------------
    batch_shards = max(1, int(batch_shards))
    Bs = -(-B // batch_shards)            # rows per batch shard
    Bs = -(-Bs // 8) * 8                  # sublane-align each shard (f32: 8)
    Bp = Bs * batch_shards
    BUp = -(-BU // 128) * 128             # lane-align backbone width

    tt = T if tt is None else int(max(1, min(tt, T)))
    n_chunks = -(-T // tt)
    Tp = n_chunks * tt

    # ---- fold constants / fuse heads in the wrapper ------------------------
    w_bb_x = 0.666 * params["W_bb_x"]
    b_bb = 0.666 * params["b_bb"]
    wbh = 0.666 * params["W_bb_h"]
    # ts == 1.0 (timespans=None) -> time_a and time_b heads fuse additively.
    W_heads = 1.7159 * jnp.concatenate(
        [params["W_ff1"], params["W_ff2"], params["W_ta"] + params["W_tb"]],
        axis=1)                                                   # (BU, 3H)
    b_heads = jnp.concatenate(
        [params["b_ff1"], params["b_ff2"], params["b_ta"] + params["b_tb"]],
        axis=1)                                                   # (1, 3H)

    # ---- hoisted (non-recurrent) input projection: one big matmul ----------
    x_tbc = jnp.transpose(x_btc, (1, 0, 2))                       # (T, B, C)
    xp = jnp.einsum("tbc,cu->tbu", x_tbc, w_bb_x) + b_bb          # (T, B, BU)

    # Pad time / batch / backbone dims (padded lanes stay exactly zero through
    # tanh and contribute nothing; padded batch rows are sliced off).
    xp = jnp.pad(xp, ((0, Tp - T), (0, Bp - B), (0, BUp - BU)))
    h0p = jnp.pad(h0, ((0, Bp - B), (0, 0))).astype(jnp.float32)
    wbh = jnp.pad(wbh, ((0, 0), (0, BUp - BU)))
    W_heads = jnp.pad(W_heads, ((0, BUp - BU), (0, 0)))

    xp = xp.astype(mxu_dtype)
    wbh = wbh.astype(mxu_dtype)
    W_heads = W_heads.astype(mxu_dtype)
    b_heads = b_heads.astype(jnp.float32)

    # ---- VMEM budget (double-buffered streaming blocks + weights) ----------
    isz = jnp.dtype(mxu_dtype).itemsize
    vmem_est = (2 * tt * Bs * BUp * isz          # xp chunk (double-buffered)
                + 2 * tt * Bs * H * 4            # y chunk (double-buffered)
                + 2 * (H * BUp + BUp * 3 * H) * isz
                + 2 * (3 * H) * 4
                + 3 * Bs * H * 4)                # h0 (x2) + scratch
    vmem_limit = int(min(64 << 20, max(32 << 20, 2 * vmem_est + (4 << 20))))

    grid_spec = pltpu.PrefetchScalarGridSpec(
        num_scalar_prefetch=0,
        grid=(batch_shards, n_chunks),           # (parallel, sequential)
        in_specs=[
            pl.BlockSpec((tt, Bs, BUp), lambda b, c: (c, b, 0)),  # xp chunk
            pl.BlockSpec((Bs, H), lambda b, c: (b, 0)),           # h0 shard
            pl.BlockSpec((H, BUp), lambda b, c: (0, 0)),          # W_bb_h
            pl.BlockSpec((BUp, 3 * H), lambda b, c: (0, 0)),      # fused heads W
            pl.BlockSpec((1, 3 * H), lambda b, c: (0, 0)),        # fused heads b
        ],
        out_specs=pl.BlockSpec((tt, Bs, H), lambda b, c: (c, b, 0)),
        scratch_shapes=[pltpu.VMEM((Bs, H), jnp.float32)],
    )

    y_tbh = pl.pallas_call(
        _cfc_chunk_kernel,
        out_shape=jax.ShapeDtypeStruct((Tp, Bp, H), jnp.float32),
        grid_spec=grid_spec,
        compiler_params=pltpu.CompilerParams(
            dimension_semantics=("parallel", "arbitrary"),
            vmem_limit_bytes=vmem_limit),
    )(xp, h0p, wbh, W_heads, b_heads)

    # return_sequences=True -> the final hidden state is the last real output.
    hn = y_tbh[T - 1, :B]
    readout = jnp.transpose(y_tbh[:T, :B], (1, 0, 2))   # batch-first (B, T, H)
    return readout, hn


def cfc_reference(x_btc, h0, params):
    """Pure-JAX reference of the same forward (for correctness check)."""
    def step(h, x_t):
        pre = x_t @ params["W_bb_x"] + h @ params["W_bb_h"] + params["b_bb"]
        bb = 1.7159 * jnp.tanh(0.666 * pre)
        ff1 = jnp.tanh(bb @ params["W_ff1"] + params["b_ff1"])
        ff2 = jnp.tanh(bb @ params["W_ff2"] + params["b_ff2"])
        t_a = bb @ params["W_ta"] + params["b_ta"]
        t_b = bb @ params["W_tb"] + params["b_tb"]
        t_interp = jax.nn.sigmoid(t_a * 1.0 + t_b)
        h_new = ff1 * (1.0 - t_interp) + t_interp * ff2
        return h_new, h_new

    hn, ys = jax.lax.scan(step, h0, jnp.transpose(x_btc, (1, 0, 2)))
    return jnp.transpose(ys, (1, 0, 2)), hn


def init_params(key, C, H, BU):
    """Xavier-uniform weights (like init_weights), small uniform biases. Stored
    as (in, out) so the kernel does x @ W (PyTorch Linear stores (out, in))."""
    def xavier(k, fan_in, fan_out):
        bound = float(np.sqrt(6.0 / (fan_in + fan_out)))
        return jax.random.uniform(k, (fan_in, fan_out), jnp.float32, -bound, bound)

    ks = jax.random.split(key, 12)
    cat = C + H
    W_bb = xavier(ks[0], cat, BU)
    return {
        "W_bb_x": W_bb[:C],
        "W_bb_h": W_bb[C:],
        "b_bb": jax.random.uniform(ks[1], (1, BU), jnp.float32, -0.1, 0.1),
        "W_ff1": xavier(ks[2], BU, H),
        "b_ff1": jax.random.uniform(ks[3], (1, H), jnp.float32, -0.1, 0.1),
        "W_ff2": xavier(ks[4], BU, H),
        "b_ff2": jax.random.uniform(ks[5], (1, H), jnp.float32, -0.1, 0.1),
        "W_ta": xavier(ks[6], BU, H),
        "b_ta": jax.random.uniform(ks[7], (1, H), jnp.float32, -0.1, 0.1),
        "W_tb": xavier(ks[8], BU, H),
        "b_tb": jax.random.uniform(ks[9], (1, H), jnp.float32, -0.1, 0.1),
    }


if __name__ == "__main__":
    B, T, C, H, BU = 2, 8, 4, 32, 64

    key = jax.random.PRNGKey(0)
    k_x, k_p = jax.random.split(key)
    x = jax.random.normal(k_x, (B, T, C), jnp.float32)
    h0 = jnp.zeros((B, H), jnp.float32)   # hx=None -> zero initial state
    params = init_params(k_p, C, H, BU)

    ref_readout, ref_hn = cfc_reference(x, h0, params)

    # Main config: tt = T (single grid step -> minimal pipeline overhead).
    readout, hn = jax.block_until_ready(cfc_forward(x, h0, params))
    assert readout.shape == (B, T, H) and hn.shape == (B, H)
    np.testing.assert_allclose(np.asarray(readout), np.asarray(ref_readout),
                               rtol=1e-5, atol=1e-5)
    np.testing.assert_allclose(np.asarray(hn), np.asarray(ref_hn),
                               rtol=1e-5, atol=1e-5)

    # Exercise the chunked path (cross-chunk h carry + padded tail timesteps).
    readout2, hn2 = jax.block_until_ready(cfc_forward(x, h0, params, tt=3))
    np.testing.assert_allclose(np.asarray(readout2), np.asarray(ref_readout),
                               rtol=1e-5, atol=1e-5)
    np.testing.assert_allclose(np.asarray(hn2), np.asarray(ref_hn),
                               rtol=1e-5, atol=1e-5)

    # Exercise the parallel batch-shard axis (v7x second TensorCore path).
    readout3, hn3 = jax.block_until_ready(
        cfc_forward(x, h0, params, batch_shards=2))
    np.testing.assert_allclose(np.asarray(readout3), np.asarray(ref_readout),
                               rtol=1e-5, atol=1e-5)
    np.testing.assert_allclose(np.asarray(hn3), np.asarray(ref_hn),
                               rtol=1e-5, atol=1e-5)

    print("KERNEL_OK")
</pallas_src>

<mosaic_0001>
module attributes {stable_mosaic.version = 11 : i64} {
  func.func @_cfc_chunk_kernel(%arg0: i32, %arg1: i32, %arg2: memref<8x8x128xf32, #tpu.memory_space<vmem>>, %arg3: memref<8x32xf32, #tpu.memory_space<vmem>>, %arg4: memref<32x128xf32, #tpu.memory_space<vmem>>, %arg5: memref<128x96xf32, #tpu.memory_space<vmem>>, %arg6: memref<1x96xf32, #tpu.memory_space<vmem>>, %arg7: memref<8x8x32xf32, #tpu.memory_space<vmem>>, %arg8: memref<8x32xf32, #tpu.memory_space<vmem>>) attributes {dimension_semantics = [#tpu.dimension_semantics<parallel>, #tpu.dimension_semantics<arbitrary>], iteration_bounds = array<i64: 1, 1>, scalar_prefetch = 0 : i64, scratch_operands = 1 : i64, tpu.core_type = #tpu.core_type<tc>, window_params = [{transform_indices = @transform_0, window_bounds = array<i64: 8, 8, 128>}, {transform_indices = @transform_1, window_bounds = array<i64: 8, 32>}, {pipeline_mode = #tpu.pipeline_mode<synchronous>, transform_indices = @transform_2, window_bounds = array<i64: 32, 128>}, {pipeline_mode = #tpu.pipeline_mode<synchronous>, transform_indices = @transform_3, window_bounds = array<i64: 128, 96>}, {pipeline_mode = #tpu.pipeline_mode<synchronous>, transform_indices = @transform_4, window_bounds = array<i64: 1, 96>}, {transform_indices = @transform_5, window_bounds = array<i64: 8, 8, 32>}]} {
    %c0_i32 = arith.constant 0 : i32
    %0 = arith.cmpi eq, %arg1, %c0_i32 : i32
    %1 = arith.extui %0 : i1 to i32
    %c0_i32_0 = arith.constant 0 : i32
    %2 = arith.cmpi ne, %1, %c0_i32_0 : i32
    scf.if %2 {
      %c0_66 = arith.constant 0 : index
      %c0_67 = arith.constant 0 : index
      %210 = vector.load %arg3[%c0_66, %c0_67] : memref<8x32xf32, #tpu.memory_space<vmem>>, vector<8x32xf32>
      %c0_68 = arith.constant 0 : index
      %c0_69 = arith.constant 0 : index
      %211 = vector.load %arg8[%c0_68, %c0_69] : memref<8x32xf32, #tpu.memory_space<vmem>>, vector<8x32xf32>
      tpu.vector_store %arg8[%c0_68, %c0_69], %210 {strides = array<i32>} : memref<8x32xf32, #tpu.memory_space<vmem>>, vector<8x32xf32>,
    } else {
    }
    %c0 = arith.constant 0 : index
    %c0_1 = arith.constant 0 : index
    %3 = vector.load %arg4[%c0, %c0_1] : memref<32x128xf32, #tpu.memory_space<vmem>>, vector<32x128xf32>
    %c0_2 = arith.constant 0 : index
    %c0_3 = arith.constant 0 : index
    %4 = vector.load %arg5[%c0_2, %c0_3] : memref<128x96xf32, #tpu.memory_space<vmem>>, vector<128x96xf32>
    %c0_4 = arith.constant 0 : index
    %c0_5 = arith.constant 0 : index
    %5 = vector.load %arg6[%c0_4, %c0_5] : memref<1x96xf32, #tpu.memory_space<vmem>>, vector<1x96xf32>
    %6 = vector.shape_cast %5 : vector<1x96xf32> to vector<1x96xf32>
    %7 = vector.broadcast %6 : vector<1x96xf32> to vector<8x96xf32>
    %c0_6 = arith.constant 0 : index
    %c0_7 = arith.constant 0 : index
    %8 = vector.load %arg8[%c0_6, %c0_7] : memref<8x32xf32, #tpu.memory_space<vmem>>, vector<8x32xf32>
    %c0_i32_8 = arith.constant 0 : i32
    %9 = arith.index_cast %c0_i32_8 : i32 to index
    %c0_9 = arith.constant 0 : index
    %c0_10 = arith.constant 0 : index
    %10 = vector.load %arg2[%9, %c0_9, %c0_10] : memref<8x8x128xf32, #tpu.memory_space<vmem>>, vector<1x8x128xf32>
    %11 = vector.shape_cast %10 : vector<1x8x128xf32> to vector<8x128xf32>
    %cst = arith.constant dense<0.000000e+00> : vector<8x128xf32>
    %12 = tpu.matmul %8, %3, %cst {dimension_numbers = #tpu.dot_dimension_numbers<[1], [0], [0], [1], [0, 0, 1, 1], [], []>} : vector<8x32xf32>, vector<32x128xf32>, vector<8x128xf32> -> vector<8x128xf32>
    %13 = arith.addf %11, %12 : vector<8x128xf32>
    %14 = math.tanh %13 : vector<8x128xf32>
    %cst_11 = arith.constant dense<0.000000e+00> : vector<8x96xf32>
    %15 = tpu.matmul %14, %4, %cst_11 {dimension_numbers = #tpu.dot_dimension_numbers<[1], [0], [0], [1], [0, 0, 1, 1], [], []>} : vector<8x128xf32>, vector<128x96xf32>, vector<8x96xf32> -> vector<8x96xf32>
    %16 = arith.addf %15, %7 : vector<8x96xf32>
    %17 = vector.extract_strided_slice %16 {offsets = [0, 0], sizes = [8, 64], strides = [1, 1]} : vector<8x96xf32> to vector<8x64xf32>
    %18 = math.tanh %17 : vector<8x64xf32>
    %19 = vector.extract_strided_slice %18 {offsets = [0, 0], sizes = [8, 32], strides = [1, 1]} : vector<8x64xf32> to vector<8x32xf32>
    %20 = vector.extract_strided_slice %18 {offsets = [0, 32], sizes = [8, 32], strides = [1, 1]} : vector<8x64xf32> to vector<8x32xf32>
    %21 = vector.extract_strided_slice %16 {offsets = [0, 64], sizes = [8, 32], strides = [1, 1]} : vector<8x96xf32> to vector<8x32xf32>
    %22 = arith.negf %21 : vector<8x32xf32>
    %23 = math.exp %22 : vector<8x32xf32>
    %cst_12 = arith.constant 1.000000e+00 : f32
    %24 = vector.broadcast %cst_12 : f32 to vector<8x32xf32>
    %25 = arith.addf %24, %23 : vector<8x32xf32>
    %26 = arith.divf %24, %25 : vector<8x32xf32>
    %27 = arith.subf %20, %19 : vector<8x32xf32>
    %28 = arith.mulf %26, %27 : vector<8x32xf32>
    %29 = arith.addf %19, %28 : vector<8x32xf32>
    %30 = arith.index_cast %c0_i32_8 : i32 to index
    %c0_13 = arith.constant 0 : index
    %c0_14 = arith.constant 0 : index
    %31 = vector.load %arg7[%30, %c0_13, %c0_14] : memref<8x8x32xf32, #tpu.memory_space<vmem>>, vector<1x8x32xf32>
    %32 = vector.shape_cast %31 : vector<1x8x32xf32> to vector<8x32xf32>
    %33 = vector.shape_cast %29 : vector<8x32xf32> to vector<1x8x32xf32>
    tpu.vector_store %arg7[%30, %c0_13, %c0_14], %33 {strides = array<i32>} : memref<8x8x32xf32, #tpu.memory_space<vmem>>, vector<1x8x32xf32>,
    %c1_i32 = arith.constant 1 : i32
    %34 = arith.index_cast %c1_i32 : i32 to index
    %c0_15 = arith.constant 0 : index
    %c0_16 = arith.constant 0 : index
    %35 = vector.load %arg2[%34, %c0_15, %c0_16] : memref<8x8x128xf32, #tpu.memory_space<vmem>>, vector<1x8x128xf32>
    %36 = vector.shape_cast %35 : vector<1x8x128xf32> to vector<8x128xf32>
    %cst_17 = arith.constant dense<0.000000e+00> : vector<8x128xf32>
    %37 = tpu.matmul %29, %3, %cst_17 {dimension_numbers = #tpu.dot_dimension_numbers<[1], [0], [0], [1], [0, 0, 1, 1], [], []>} : vector<8x32xf32>, vector<32x128xf32>, vector<8x128xf32> -> vector<8x128xf32>
    %38 = arith.addf %36, %37 : vector<8x128xf32>
    %39 = math.tanh %38 : vector<8x128xf32>
    %cst_18 = arith.constant dense<0.000000e+00> : vector<8x96xf32>
    %40 = tpu.matmul %39, %4, %cst_18 {dimension_numbers = #tpu.dot_dimension_numbers<[1], [0], [0], [1], [0, 0, 1, 1], [], []>} : vector<8x128xf32>, vector<128x96xf32>, vector<8x96xf32> -> vector<8x96xf32>
    %41 = arith.addf %40, %7 : vector<8x96xf32>
    %42 = vector.extract_strided_slice %41 {offsets = [0, 0], sizes = [8, 64], strides = [1, 1]} : vector<8x96xf32> to vector<8x64xf32>
    %43 = math.tanh %42 : vector<8x64xf32>
    %44 = vector.extract_strided_slice %43 {offsets = [0, 0], sizes = [8, 32], strides = [1, 1]} : vector<8x64xf32> to vector<8x32xf32>
    %45 = vector.extract_strided_slice %43 {offsets = [0, 32], sizes = [8, 32], strides = [1, 1]} : vector<8x64xf32> to vector<8x32xf32>
    %46 = vector.extract_strided_slice %41 {offsets = [0, 64], sizes = [8, 32], strides = [1, 1]} : vector<8x96xf32> to vector<8x32xf32>
    %47 = arith.negf %46 : vector<8x32xf32>
    %48 = math.exp %47 : vector<8x32xf32>
    %cst_19 = arith.constant 1.000000e+00 : f32
    %49 = vector.broadcast %cst_19 : f32 to vector<8x32xf32>
    %50 = arith.addf %49, %48 : vector<8x32xf32>
    %51 = arith.divf %49, %50 : vector<8x32xf32>
    %52 = arith.subf %45, %44 : vector<8x32xf32>
    %53 = arith.mulf %51, %52 : vector<8x32xf32>
    %54 = arith.addf %44, %53 : vector<8x32xf32>
    %55 = arith.index_cast %c1_i32 : i32 to index
    %c0_20 = arith.constant 0 : index
    %c0_21 = arith.constant 0 : index
    %56 = vector.load %arg7[%55, %c0_20, %c0_21] : memref<8x8x32xf32, #tpu.memory_space<vmem>>, vector<1x8x32xf32>
    %57 = vector.shape_cast %56 : vector<1x8x32xf32> to vector<8x32xf32>
    %58 = vector.shape_cast %54 : vector<8x32xf32> to vector<1x8x32xf32>
    tpu.vector_store %arg7[%55, %c0_20, %c0_21], %58 {strides = array<i32>} : memref<8x8x32xf32, #tpu.memory_space<vmem>>, vector<1x8x32xf32>,
    %c2_i32 = arith.constant 2 : i32
    %59 = arith.index_cast %c2_i32 : i32 to index
    %c0_22 = arith.constant 0 : index
    %c0_23 = arith.constant 0 : index
    %60 = vector.load %arg2[%59, %c0_22, %c0_23] : memref<8x8x128xf32, #tpu.memory_space<vmem>>, vector<1x8x128xf32>
    %61 = vector.shape_cast %60 : vector<1x8x128xf32> to vector<8x128xf32>
    %cst_24 = arith.constant dense<0.000000e+00> : vector<8x128xf32>
    %62 = tpu.matmul %54, %3, %cst_24 {dimension_numbers = #tpu.dot_dimension_numbers<[1], [0], [0], [1], [0, 0, 1, 1], [], []>} : vector<8x32xf32>, vector<32x128xf32>, vector<8x128xf32> -> vector<8x128xf32>
    %63 = arith.addf %61, %62 : vector<8x128xf32>
    %64 = math.tanh %63 : vector<8x128xf32>
    %cst_25 = arith.constant dense<0.000000e+00> : vector<8x96xf32>
    %65 = tpu.matmul %64, %4, %cst_25 {dimension_numbers = #tpu.dot_dimension_numbers<[1], [0], [0], [1], [0, 0, 1, 1], [], []>} : vector<8x128xf32>, vector<128x96xf32>, vector<8x96xf32> -> vector<8x96xf32>
    %66 = arith.addf %65, %7 : vector<8x96xf32>
    %67 = vector.extract_strided_slice %66 {offsets = [0, 0], sizes = [8, 64], strides = [1, 1]} : vector<8x96xf32> to vector<8x64xf32>
    %68 = math.tanh %67 : vector<8x64xf32>
    %69 = vector.extract_strided_slice %68 {offsets = [0, 0], sizes = [8, 32], strides = [1, 1]} : vector<8x64xf32> to vector<8x32xf32>
    %70 = vector.extract_strided_slice %68 {offsets = [0, 32], sizes = [8, 32], strides = [1, 1]} : vector<8x64xf32> to vector<8x32xf32>
    %71 = vector.extract_strided_slice %66 {offsets = [0, 64], sizes = [8, 32], strides = [1, 1]} : vector<8x96xf32> to vector<8x32xf32>
    %72 = arith.negf %71 : vector<8x32xf32>
    %73 = math.exp %72 : vector<8x32xf32>
    %cst_26 = arith.constant 1.000000e+00 : f32
    %74 = vector.broadcast %cst_26 : f32 to vector<8x32xf32>
    %75 = arith.addf %74, %73 : vector<8x32xf32>
    %76 = arith.divf %74, %75 : vector<8x32xf32>
    %77 = arith.subf %70, %69 : vector<8x32xf32>
    %78 = arith.mulf %76, %77 : vector<8x32xf32>
    %79 = arith.addf %69, %78 : vector<8x32xf32>
    %80 = arith.index_cast %c2_i32 : i32 to index
    %c0_27 = arith.constant 0 : index
    %c0_28 = arith.constant 0 : index
    %81 = vector.load %arg7[%80, %c0_27, %c0_28] : memref<8x8x32xf32, #tpu.memory_space<vmem>>, vector<1x8x32xf32>
    %82 = vector.shape_cast %81 : vector<1x8x32xf32> to vector<8x32xf32>
    %83 = vector.shape_cast %79 : vector<8x32xf32> to vector<1x8x32xf32>
    tpu.vector_store %arg7[%80, %c0_27, %c0_28], %83 {strides = array<i32>} : memref<8x8x32xf32, #tpu.memory_space<vmem>>, vector<1x8x32xf32>,
    %c3_i32 = arith.constant 3 : i32
    %84 = arith.index_cast %c3_i32 : i32 to index
    %c0_29 = arith.constant 0 : index
    %c0_30 = arith.constant 0 : index
    %85 = vector.load %arg2[%84, %c0_29, %c0_30] : memref<8x8x128xf32, #tpu.memory_space<vmem>>, vector<1x8x128xf32>
    %86 = vector.shape_cast %85 : vector<1x8x128xf32> to vector<8x128xf32>
    %cst_31 = arith.constant dense<0.000000e+00> : vector<8x128xf32>
    %87 = tpu.matmul %79, %3, %cst_31 {dimension_numbers = #tpu.dot_dimension_numbers<[1], [0], [0], [1], [0, 0, 1, 1], [], []>} : vector<8x32xf32>, vector<32x128xf32>, vector<8x128xf32> -> vector<8x128xf32>
    %88 = arith.addf %86, %87 : vector<8x128xf32>
    %89 = math.tanh %88 : vector<8x128xf32>
    %cst_32 = arith.constant dense<0.000000e+00> : vector<8x96xf32>
    %90 = tpu.matmul %89, %4, %cst_32 {dimension_numbers = #tpu.dot_dimension_numbers<[1], [0], [0], [1], [0, 0, 1, 1], [], []>} : vector<8x128xf32>, vector<128x96xf32>, vector<8x96xf32> -> vector<8x96xf32>
    %91 = arith.addf %90, %7 : vector<8x96xf32>
    %92 = vector.extract_strided_slice %91 {offsets = [0, 0], sizes = [8, 64], strides = [1, 1]} : vector<8x96xf32> to vector<8x64xf32>
    %93 = math.tanh %92 : vector<8x64xf32>
    %94 = vector.extract_strided_slice %93 {offsets = [0, 0], sizes = [8, 32], strides = [1, 1]} : vector<8x64xf32> to vector<8x32xf32>
    %95 = vector.extract_strided_slice %93 {offsets = [0, 32], sizes = [8, 32], strides = [1, 1]} : vector<8x64xf32> to vector<8x32xf32>
    %96 = vector.extract_strided_slice %91 {offsets = [0, 64], sizes = [8, 32], strides = [1, 1]} : vector<8x96xf32> to vector<8x32xf32>
    %97 = arith.negf %96 : vector<8x32xf32>
    %98 = math.exp %97 : vector<8x32xf32>
    %cst_33 = arith.constant 1.000000e+00 : f32
    %99 = vector.broadcast %cst_33 : f32 to vector<8x32xf32>
    %100 = arith.addf %99, %98 : vector<8x32xf32>
    %101 = arith.divf %99, %100 : vector<8x32xf32>
    %102 = arith.subf %95, %94 : vector<8x32xf32>
    %103 = arith.mulf %101, %102 : vector<8x32xf32>
    %104 = arith.addf %94, %103 : vector<8x32xf32>
    %105 = arith.index_cast %c3_i32 : i32 to index
    %c0_34 = arith.constant 0 : index
    %c0_35 = arith.constant 0 : index
    %106 = vector.load %arg7[%105, %c0_34, %c0_35] : memref<8x8x32xf32, #tpu.memory_space<vmem>>, vector<1x8x32xf32>
    %107 = vector.shape_cast %106 : vector<1x8x32xf32> to vector<8x32xf32>
    %108 = vector.shape_cast %104 : vector<8x32xf32> to vector<1x8x32xf32>
    tpu.vector_store %arg7[%105, %c0_34, %c0_35], %108 {strides = array<i32>} : memref<8x8x32xf32, #tpu.memory_space<vmem>>, vector<1x8x32xf32>,
    %c4_i32 = arith.constant 4 : i32
    %109 = arith.index_cast %c4_i32 : i32 to index
    %c0_36 = arith.constant 0 : index
    %c0_37 = arith.constant 0 : index
    %110 = vector.load %arg2[%109, %c0_36, %c0_37] : memref<8x8x128xf32, #tpu.memory_space<vmem>>, vector<1x8x128xf32>
    %111 = vector.shape_cast %110 : vector<1x8x128xf32> to vector<8x128xf32>
    %cst_38 = arith.constant dense<0.000000e+00> : vector<8x128xf32>
    %112 = tpu.matmul %104, %3, %cst_38 {dimension_numbers = #tpu.dot_dimension_numbers<[1], [0], [0], [1], [0, 0, 1, 1], [], []>} : vector<8x32xf32>, vector<32x128xf32>, vector<8x128xf32> -> vector<8x128xf32>
    %113 = arith.addf %111, %112 : vector<8x128xf32>
    %114 = math.tanh %113 : vector<8x128xf32>
    %cst_39 = arith.constant dense<0.000000e+00> : vector<8x96xf32>
    %115 = tpu.matmul %114, %4, %cst_39 {dimension_numbers = #tpu.dot_dimension_numbers<[1], [0], [0], [1], [0, 0, 1, 1], [], []>} : vector<8x128xf32>, vector<128x96xf32>, vector<8x96xf32> -> vector<8x96xf32>
    %116 = arith.addf %115, %7 : vector<8x96xf32>
    %117 = vector.extract_strided_slice %116 {offsets = [0, 0], sizes = [8, 64], strides = [1, 1]} : vector<8x96xf32> to vector<8x64xf32>
    %118 = math.tanh %117 : vector<8x64xf32>
    %119 = vector.extract_strided_slice %118 {offsets = [0, 0], sizes = [8, 32], strides = [1, 1]} : vector<8x64xf32> to vector<8x32xf32>
    %120 = vector.extract_strided_slice %118 {offsets = [0, 32], sizes = [8, 32], strides = [1, 1]} : vector<8x64xf32> to vector<8x32xf32>
    %121 = vector.extract_strided_slice %116 {offsets = [0, 64], sizes = [8, 32], strides = [1, 1]} : vector<8x96xf32> to vector<8x32xf32>
    %122 = arith.negf %121 : vector<8x32xf32>
    %123 = math.exp %122 : vector<8x32xf32>
    %cst_40 = arith.constant 1.000000e+00 : f32
    %124 = vector.broadcast %cst_40 : f32 to vector<8x32xf32>
    %125 = arith.addf %124, %123 : vector<8x32xf32>
    %126 = arith.divf %124, %125 : vector<8x32xf32>
    %127 = arith.subf %120, %119 : vector<8x32xf32>
    %128 = arith.mulf %126, %127 : vector<8x32xf32>
    %129 = arith.addf %119, %128 : vector<8x32xf32>
    %130 = arith.index_cast %c4_i32 : i32 to index
    %c0_41 = arith.constant 0 : index
    %c0_42 = arith.constant 0 : index
    %131 = vector.load %arg7[%130, %c0_41, %c0_42] : memref<8x8x32xf32, #tpu.memory_space<vmem>>, vector<1x8x32xf32>
    %132 = vector.shape_cast %131 : vector<1x8x32xf32> to vector<8x32xf32>
    %133 = vector.shape_cast %129 : vector<8x32xf32> to vector<1x8x32xf32>
    tpu.vector_store %arg7[%130, %c0_41, %c0_42], %133 {strides = array<i32>} : memref<8x8x32xf32, #tpu.memory_space<vmem>>, vector<1x8x32xf32>,
    %c5_i32 = arith.constant 5 : i32
    %134 = arith.index_cast %c5_i32 : i32 to index
    %c0_43 = arith.constant 0 : index
    %c0_44 = arith.constant 0 : index
    %135 = vector.load %arg2[%134, %c0_43, %c0_44] : memref<8x8x128xf32, #tpu.memory_space<vmem>>, vector<1x8x128xf32>
    %136 = vector.shape_cast %135 : vector<1x8x128xf32> to vector<8x128xf32>
    %cst_45 = arith.constant dense<0.000000e+00> : vector<8x128xf32>
    %137 = tpu.matmul %129, %3, %cst_45 {dimension_numbers = #tpu.dot_dimension_numbers<[1], [0], [0], [1], [0, 0, 1, 1], [], []>} : vector<8x32xf32>, vector<32x128xf32>, vector<8x128xf32> -> vector<8x128xf32>
    %138 = arith.addf %136, %137 : vector<8x128xf32>
    %139 = math.tanh %138 : vector<8x128xf32>
    %cst_46 = arith.constant dense<0.000000e+00> : vector<8x96xf32>
    %140 = tpu.matmul %139, %4, %cst_46 {dimension_numbers = #tpu.dot_dimension_numbers<[1], [0], [0], [1], [0, 0, 1, 1], [], []>} : vector<8x128xf32>, vector<128x96xf32>, vector<8x96xf32> -> vector<8x96xf32>
    %141 = arith.addf %140, %7 : vector<8x96xf32>
    %142 = vector.extract_strided_slice %141 {offsets = [0, 0], sizes = [8, 64], strides = [1, 1]} : vector<8x96xf32> to vector<8x64xf32>
    %143 = math.tanh %142 : vector<8x64xf32>
    %144 = vector.extract_strided_slice %143 {offsets = [0, 0], sizes = [8, 32], strides = [1, 1]} : vector<8x64xf32> to vector<8x32xf32>
    %145 = vector.extract_strided_slice %143 {offsets = [0, 32], sizes = [8, 32], strides = [1, 1]} : vector<8x64xf32> to vector<8x32xf32>
    %146 = vector.extract_strided_slice %141 {offsets = [0, 64], sizes = [8, 32], strides = [1, 1]} : vector<8x96xf32> to vector<8x32xf32>
    %147 = arith.negf %146 : vector<8x32xf32>
    %148 = math.exp %147 : vector<8x32xf32>
    %cst_47 = arith.constant 1.000000e+00 : f32
    %149 = vector.broadcast %cst_47 : f32 to vector<8x32xf32>
    %150 = arith.addf %149, %148 : vector<8x32xf32>
    %151 = arith.divf %149, %150 : vector<8x32xf32>
    %152 = arith.subf %145, %144 : vector<8x32xf32>
    %153 = arith.mulf %151, %152 : vector<8x32xf32>
    %154 = arith.addf %144, %153 : vector<8x32xf32>
    %155 = arith.index_cast %c5_i32 : i32 to index
    %c0_48 = arith.constant 0 : index
    %c0_49 = arith.constant 0 : index
    %156 = vector.load %arg7[%155, %c0_48, %c0_49] : memref<8x8x32xf32, #tpu.memory_space<vmem>>, vector<1x8x32xf32>
    %157 = vector.shape_cast %156 : vector<1x8x32xf32> to vector<8x32xf32>
    %158 = vector.shape_cast %154 : vector<8x32xf32> to vector<1x8x32xf32>
    tpu.vector_store %arg7[%155, %c0_48, %c0_49], %158 {strides = array<i32>} : memref<8x8x32xf32, #tpu.memory_space<vmem>>, vector<1x8x32xf32>,
    %c6_i32 = arith.constant 6 : i32
    %159 = arith.index_cast %c6_i32 : i32 to index
    %c0_50 = arith.constant 0 : index
    %c0_51 = arith.constant 0 : index
    %160 = vector.load %arg2[%159, %c0_50, %c0_51] : memref<8x8x128xf32, #tpu.memory_space<vmem>>, vector<1x8x128xf32>
    %161 = vector.shape_cast %160 : vector<1x8x128xf32> to vector<8x128xf32>
    %cst_52 = arith.constant dense<0.000000e+00> : vector<8x128xf32>
    %162 = tpu.matmul %154, %3, %cst_52 {dimension_numbers = #tpu.dot_dimension_numbers<[1], [0], [0], [1], [0, 0, 1, 1], [], []>} : vector<8x32xf32>, vector<32x128xf32>, vector<8x128xf32> -> vector<8x128xf32>
    %163 = arith.addf %161, %162 : vector<8x128xf32>
    %164 = math.tanh %163 : vector<8x128xf32>
    %cst_53 = arith.constant dense<0.000000e+00> : vector<8x96xf32>
    %165 = tpu.matmul %164, %4, %cst_53 {dimension_numbers = #tpu.dot_dimension_numbers<[1], [0], [0], [1], [0, 0, 1, 1], [], []>} : vector<8x128xf32>, vector<128x96xf32>, vector<8x96xf32> -> vector<8x96xf32>
    %166 = arith.addf %165, %7 : vector<8x96xf32>
    %167 = vector.extract_strided_slice %166 {offsets = [0, 0], sizes = [8, 64], strides = [1, 1]} : vector<8x96xf32> to vector<8x64xf32>
    %168 = math.tanh %167 : vector<8x64xf32>
    %169 = vector.extract_strided_slice %168 {offsets = [0, 0], sizes = [8, 32], strides = [1, 1]} : vector<8x64xf32> to vector<8x32xf32>
    %170 = vector.extract_strided_slice %168 {offsets = [0, 32], sizes = [8, 32], strides = [1, 1]} : vector<8x64xf32> to vector<8x32xf32>
    %171 = vector.extract_strided_slice %166 {offsets = [0, 64], sizes = [8, 32], strides = [1, 1]} : vector<8x96xf32> to vector<8x32xf32>
    %172 = arith.negf %171 : vector<8x32xf32>
    %173 = math.exp %172 : vector<8x32xf32>
    %cst_54 = arith.constant 1.000000e+00 : f32
    %174 = vector.broadcast %cst_54 : f32 to vector<8x32xf32>
    %175 = arith.addf %174, %173 : vector<8x32xf32>
    %176 = arith.divf %174, %175 : vector<8x32xf32>
    %177 = arith.subf %170, %169 : vector<8x32xf32>
    %178 = arith.mulf %176, %177 : vector<8x32xf32>
    %179 = arith.addf %169, %178 : vector<8x32xf32>
    %180 = arith.index_cast %c6_i32 : i32 to index
    %c0_55 = arith.constant 0 : index
    %c0_56 = arith.constant 0 : index
    %181 = vector.load %arg7[%180, %c0_55, %c0_56] : memref<8x8x32xf32, #tpu.memory_space<vmem>>, vector<1x8x32xf32>
    %182 = vector.shape_cast %181 : vector<1x8x32xf32> to vector<8x32xf32>
    %183 = vector.shape_cast %179 : vector<8x32xf32> to vector<1x8x32xf32>
    tpu.vector_store %arg7[%180, %c0_55, %c0_56], %183 {strides = array<i32>} : memref<8x8x32xf32, #tpu.memory_space<vmem>>, vector<1x8x32xf32>,
    %c7_i32 = arith.constant 7 : i32
    %184 = arith.index_cast %c7_i32 : i32 to index
    %c0_57 = arith.constant 0 : index
    %c0_58 = arith.constant 0 : index
    %185 = vector.load %arg2[%184, %c0_57, %c0_58] : memref<8x8x128xf32, #tpu.memory_space<vmem>>, vector<1x8x128xf32>
    %186 = vector.shape_cast %185 : vector<1x8x128xf32> to vector<8x128xf32>
    %cst_59 = arith.constant dense<0.000000e+00> : vector<8x128xf32>
    %187 = tpu.matmul %179, %3, %cst_59 {dimension_numbers = #tpu.dot_dimension_numbers<[1], [0], [0], [1], [0, 0, 1, 1], [], []>} : vector<8x32xf32>, vector<32x128xf32>, vector<8x128xf32> -> vector<8x128xf32>
    %188 = arith.addf %186, %187 : vector<8x128xf32>
    %189 = math.tanh %188 : vector<8x128xf32>
    %cst_60 = arith.constant dense<0.000000e+00> : vector<8x96xf32>
    %190 = tpu.matmul %189, %4, %cst_60 {dimension_numbers = #tpu.dot_dimension_numbers<[1], [0], [0], [1], [0, 0, 1, 1], [], []>} : vector<8x128xf32>, vector<128x96xf32>, vector<8x96xf32> -> vector<8x96xf32>
    %191 = arith.addf %190, %7 : vector<8x96xf32>
    %192 = vector.extract_strided_slice %191 {offsets = [0, 0], sizes = [8, 64], strides = [1, 1]} : vector<8x96xf32> to vector<8x64xf32>
    %193 = math.tanh %192 : vector<8x64xf32>
    %194 = vector.extract_strided_slice %193 {offsets = [0, 0], sizes = [8, 32], strides = [1, 1]} : vector<8x64xf32> to vector<8x32xf32>
    %195 = vector.extract_strided_slice %193 {offsets = [0, 32], sizes = [8, 32], strides = [1, 1]} : vector<8x64xf32> to vector<8x32xf32>
    %196 = vector.extract_strided_slice %191 {offsets = [0, 64], sizes = [8, 32], strides = [1, 1]} : vector<8x96xf32> to vector<8x32xf32>
    %197 = arith.negf %196 : vector<8x32xf32>
    %198 = math.exp %197 : vector<8x32xf32>
    %cst_61 = arith.constant 1.000000e+00 : f32
    %199 = vector.broadcast %cst_61 : f32 to vector<8x32xf32>
    %200 = arith.addf %199, %198 : vector<8x32xf32>
    %201 = arith.divf %199, %200 : vector<8x32xf32>
    %202 = arith.subf %195, %194 : vector<8x32xf32>
    %203 = arith.mulf %201, %202 : vector<8x32xf32>
    %204 = arith.addf %194, %203 : vector<8x32xf32>
    %205 = arith.index_cast %c7_i32 : i32 to index
    %c0_62 = arith.constant 0 : index
    %c0_63 = arith.constant 0 : index
    %206 = vector.load %arg7[%205, %c0_62, %c0_63] : memref<8x8x32xf32, #tpu.memory_space<vmem>>, vector<1x8x32xf32>
    %207 = vector.shape_cast %206 : vector<1x8x32xf32> to vector<8x32xf32>
    %208 = vector.shape_cast %204 : vector<8x32xf32> to vector<1x8x32xf32>
    tpu.vector_store %arg7[%205, %c0_62, %c0_63], %208 {strides = array<i32>} : memref<8x8x32xf32, #tpu.memory_space<vmem>>, vector<1x8x32xf32>,
    %c8_i32 = arith.constant 8 : i32
    %c0_64 = arith.constant 0 : index
    %c0_65 = arith.constant 0 : index
    %209 = vector.load %arg8[%c0_64, %c0_65] : memref<8x32xf32, #tpu.memory_space<vmem>>, vector<8x32xf32>
    tpu.vector_store %arg8[%c0_64, %c0_65], %204 {strides = array<i32>} : memref<8x32xf32, #tpu.memory_space<vmem>>, vector<8x32xf32>,
    return
  }
  func.func @transform_0(%arg0: i32, %arg1: i32) -> (i32, i32, i32) {
    %c0_i32 = arith.constant 0 : i32
    %c0_i32_0 = arith.constant 0 : i32
    return %arg1, %arg0, %c0_i32 : i32, i32, i32
  }
  func.func @transform_1(%arg0: i32, %arg1: i32) -> (i32, i32) {
    %c0_i32 = arith.constant 0 : i32
    %c0_i32_0 = arith.constant 0 : i32
    return %arg0, %c0_i32 : i32, i32
  }
  func.func @transform_2(%arg0: i32, %arg1: i32) -> (i32, i32) {
    %c0_i32 = arith.constant 0 : i32
    %c0_i32_0 = arith.constant 0 : i32
    %c0_i32_1 = arith.constant 0 : i32
    return %c0_i32, %c0_i32_0 : i32, i32
  }
  func.func @transform_3(%arg0: i32, %arg1: i32) -> (i32, i32) {
    %c0_i32 = arith.constant 0 : i32
    %c0_i32_0 = arith.constant 0 : i32
    %c0_i32_1 = arith.constant 0 : i32
    return %c0_i32, %c0_i32_0 : i32, i32
  }
  func.func @transform_4(%arg0: i32, %arg1: i32) -> (i32, i32) {
    %c0_i32 = arith.constant 0 : i32
    %c0_i32_0 = arith.constant 0 : i32
    %c0_i32_1 = arith.constant 0 : i32
    return %c0_i32, %c0_i32_0 : i32, i32
  }
  func.func @transform_5(%arg0: i32, %arg1: i32) -> (i32, i32, i32) {
    %c0_i32 = arith.constant 0 : i32
    %c0_i32_0 = arith.constant 0 : i32
    return %arg1, %arg0, %c0_i32 : i32, i32, i32
  }
}

</mosaic_0001>

<bundles_post_ra>
// kernel: tpu_custom_call.1
= control target key start
LH: loop header
LB: loop body
LE: loop exit
PB: predicated region body
PF: predicated region fallthrough
CT: control target
= control target key end

     0   :  { %vm26_vm0 = vcmask 261120   ;;  %v2102_v1 = vmov 0.0   ;;  %vm2103_vm1 = vmmov 0   ;;  %s2678_s0 = inlined_call_operand.vmem [shape: f32[8,8,128], index: 0, kind: input, shape index: {}]   ;;  %s2679_s1 = inlined_call_operand.vmem [shape: f32[8,32], index: 1, kind: input, shape index: {}]   ;;  %s2680_s2 = inlined_call_operand.vmem [shape: f32[32,128], index: 2, kind: input, shape index: {}]   ;;  %s2681_s3 = inlined_call_operand.vmem [shape: f32[128,96], index: 3, kind: input, shape index: {}]   ;;  %s2682_s4 = inlined_call_operand.vmem [shape: f32[1,96], index: 4, kind: input, shape index: {}]   ;;  %s2683_s5 = inlined_call_operand.hbm [shape: f32[8,8,32], index: 5, kind: output, shape index: {}]  }
   0x1   :  { %v2142_v0 = vld [vmem:[%s2680_s2 + $0x18] sm:$0xff]  ;;  %1640 = vmatprep.subr.mxu1 %v2102_v1  ;;  %v2148_v2 = vld [vmem:[%s2680_s2 + $0x10] sm:$0xff]  ;;  %1648 = vmatprep.mubr.msk.f32.mxu1 %vm2103_vm1, %v2102_v1  ;;  %v25_v3 = vld [vmem:[%s2679_s1] sm:$0xff] }
   0x2   :  { %1641 = vmatpush3.msra.mxu1 %v2142_v0  ;;  %27 = vst.msk [vmem:[#allocation2] sm:$0xff] %vm26_vm0, %v25_v3  ;;  %1686 = vmatprep.subr.mxu0 %v2102_v1  ;;  %v2162_v4 = vld [vmem:[%s2680_s2 + $0x8] sm:$0xff] }
   0x3   :  { %1642 = vmatprep.subr.mxu1 %v2102_v1  ;;  %1687 = vmatpush3.msra.mxu0 %v2142_v0 }
   0x4   :  { %1643 = vmatpush3.msra.mxu1 %v2148_v2  ;;  %1688 = vmatprep.subr.mxu0 %v2102_v1 }
   0x5   :  { %10 = vsyncpa [#allocation4], 0  ;;  %1644 = vmatprep.subr.mxu1 %v2102_v1  ;;  %v2171_v5 = vld [vmem:[%s2680_s2] sm:$0xff]  ;;  %1689 = vmatpush3.msra.mxu0 %v2148_v2  ;;  %v2182_v6 = vld [vmem:[%s2681_s3 + $0x78] sm:$0xff]  ;;  %s2104_s10 = smov 32  }
   0x6   :  { %1645 = vmatpush3.msra.mxu1 %v2162_v4  ;;  %1690 = vmatprep.subr.mxu0 %v2102_v1  ;;  %v2191_v8 = vld [vmem:[%s2681_s3 + $0x70] sm:$0xff]  ;;  %v2202_v9 = vld [vmem:[%s2681_s3 + $0x68] sm:$0xff]  ;;  %v2210_v10 = vld [vmem:[%s2681_s3 + $0x60] sm:$0xff] }
   0x7   :  { %1646 = vmatprep.subr.mxu1 %v2102_v1  ;;  %1691 = vmatpush3.msra.mxu0 %v2162_v4  ;;  %v2217_v11 = vld [vmem:[%s2681_s3 + $0x58] sm:$0xff]  ;;  %v2224_v12 = vld [vmem:[%s2681_s3 + $0x50] sm:$0xff]  ;;  %v2231_v13 = vld [vmem:[%s2681_s3 + $0x48] sm:$0xff] }
   0x8   :  { %1647 = vmatpush3.msra.mxu1 %v2171_v5  ;;  %1692 = vmatprep.subr.mxu0 %v2102_v1  ;;  %v2240_v14 = vld [vmem:[%s2681_s3 + $0x40] sm:$0xff]  ;;  %v2247_v15 = vld [vmem:[%s2681_s3 + $0x38] sm:$0xff]  ;;  %v2254_v16 = vld [vmem:[%s2681_s3 + $0x30] sm:$0xff] }
   0x9   :  { %v55_v7 = vld [vmem:[#allocation2] sm:$0xff]  ;;  %1651 = vmatprep.subr.mxu1 %v2102_v1  ;;  %1693 = vmatpush3.msra.mxu0 %v2171_v5  ;;  %v2259_v17 = vld [vmem:[%s2681_s3 + $0x28] sm:$0xff]  ;;  %v2273_v19 = vld [vmem:[%s2681_s3 + $0x18] sm:$0xff] }
   0xa   :  { %1649 = vmatmul.mubr.msk.f32.vlgmr.msra.gmra.mxu1 %vm26_vm0, %v55_v7  ;;  %1694 = vmatprep.mubr.msk.f32.mxu0 %vm2103_vm1, %v2102_v1  ;;  %v2266_v18 = vld [vmem:[%s2681_s3 + $0x20] sm:$0xff]  ;;  %v2280_v20 = vld [vmem:[%s2681_s3 + $0x10] sm:$0xff]  ;;  %v2287_v21 = vld [vmem:[%s2681_s3 + $0x8] sm:$0xff] }
   0xb   :  { %1652 = vmatpush3.msra.mxu1 %v2182_v6  ;;  %1683 = vmatprep.mubr.msk.f32.mxu1 %vm2103_vm1, %v2102_v1  ;;  %v2294_v22 = vld [vmem:[%s2681_s3] sm:$0xff]  ;;  %v1443_v43 = vld [vmem:[%s2678_s0 + $0x8] sm:$0xff]  ;;  %v1446_v62 = vld [vmem:[%s2678_s0 + $0x10] sm:$0xff] }
   0xc   :  { %1653 = vmatprep.subr.mxu1 %v2102_v1  ;;  %1697 = vmatprep.subr.mxu0 %v2102_v1  ;;  %v56_v23 = vld [vmem:[%s2678_s0] sm:$0xff] }
   0xd   :  { %1654 = vmatpush3.msra.mxu1 %v2191_v8  ;;  %v2316_v28 = vld [vmem:[%s2682_s4] ss:$0 sm:$0xff]  ;;  %s2105_s4 = smov 64  }
   0xe   :  { %1655 = vmatprep.subr.mxu1 %v2102_v1 }
   0xf   :  { %1656 = vmatpush3.msra.mxu1 %v2202_v9 }
  0x10   :  { %1657 = vmatprep.subr.mxu1 %v2102_v1 }
  0x11   :  { %1658 = vmatpush3.msra.mxu1 %v2210_v10 }
  0x12   :  { %1659 = vmatprep.subr.mxu1 %v2102_v1 }
  0x13   :  { %1660 = vmatpush3.msra.mxu1 %v2217_v11 }
  0x14   :  { %1661 = vmatprep.subr.mxu1 %v2102_v1 }
  0x15   :  { %1662 = vmatpush3.msra.mxu1 %v2224_v12 }
  0x16   :  { %1663 = vmatprep.subr.mxu1 %v2102_v1 }
  0x17   :  { %1664 = vmatpush3.msra.mxu1 %v2231_v13 }
  0x18   :  { %1665 = vmatprep.subr.mxu1 %v2102_v1 }
  0x19   :  { %1666 = vmatpush3.msra.mxu1 %v2240_v14 }
  0x1a   :  { %1667 = vmatprep.subr.mxu1 %v2102_v1 }
  0x1b   :  { %1668 = vmatpush3.msra.mxu1 %v2247_v15 }
  0x1c   :  { %1669 = vmatprep.subr.mxu1 %v2102_v1 }
  0x1d   :  { %1670 = vmatpush3.msra.mxu1 %v2254_v16 }
  0x1e   :  { %1671 = vmatprep.subr.mxu1 %v2102_v1 }
  0x1f   :  { %1672 = vmatpush3.msra.mxu1 %v2259_v17 }
  0x20   :  { %1673 = vmatprep.subr.mxu1 %v2102_v1 }
  0x21   :  { %1674 = vmatpush3.msra.mxu1 %v2266_v18 }
  0x22   :  { %1675 = vmatprep.subr.mxu1 %v2102_v1 }
  0x23   :  { %1676 = vmatpush3.msra.mxu1 %v2273_v19 }
  0x24   :  { %1677 = vmatprep.subr.mxu1 %v2102_v1 }
  0x25   :  { %1678 = vmatpush3.msra.mxu1 %v2280_v20 }
  0x26   :  { %1679 = vmatprep.subr.mxu1 %v2102_v1 }
  0x27   :  { %1680 = vmatpush3.msra.mxu1 %v2287_v21 }
  0x28   :  { %1681 = vmatprep.subr.mxu1 %v2102_v1 }
  0x29   :  { %1682 = vmatpush3.msra.mxu1 %v2294_v22 }
  0x2a   :  { %1732 = vmatprep.subr.mxu1 %v2102_v1 }
  0xca   :  { %v127_v24 = vpop.f32.mrf.mxu1 }
  0xcb   :  { %v131_v25 = vadd.f32 %v127_v24, %v56_v23 }
  0xcc   :  { %v1650_v26 = vpop.f32.mrf.mxu1 }
  0xcd   :  { %2015 = vtanh.f32 %v131_v25 }
  0xda   :  { %v2016_v27 = vpop.eup %2015 }
  0xdb   :  { %1684 = vmatmul.mubr.f32.vlgmr.msra.gmra.mxu1 %v2016_v27 }
  0xdc   :  { %1733 = vmatpush3.msra.mxu1 %v2142_v0  ;;  %1740 = vmatprep.mubr.msk.f32.mxu1 %vm2103_vm1, %v2102_v1 }
  0xdd   :  { %1734 = vmatprep.subr.mxu1 %v2102_v1 }
  0xde   :  { %1735 = vmatpush3.msra.mxu1 %v2148_v2 }
  0xdf   :  { %1736 = vmatprep.subr.mxu1 %v2102_v1 }
  0xe0   :  { %1737 = vmatpush3.msra.mxu1 %v2162_v4 }
  0xe1   :  { %1738 = vmatprep.subr.mxu1 %v2102_v1 }
  0xe2   :  { %1739 = vmatpush3.msra.mxu1 %v2171_v5 }
  0xe3   :  { %1743 = vmatprep.subr.mxu1 %v2102_v1 }
 0x19b   :  { %v199_v29 = vpop.f32.mrf.mxu1 }
 0x19c   :  { %v200_v30 = vadd.f32 %v2316_v28, %v199_v29 }
 0x19d   :  { %v1685_v31 = vpop.f32.mrf.mxu1 }
 0x19e   :  { %2017 = vtanh.f32 %v200_v30  ;;  %v1442_v35 = vmul.f32 -1.442695, %v200_v30 }
 0x1a0   :  { %2019 = vpow2.f32 %v1442_v35 }
 0x1ab   :  { %v2018_v32 = vpop.eup %2017 }
 0x1ac   :  { %211 = vrot.lane.b32.xlu0 %v2018_v32, %s2104_s10 }
 0x1ad   :  { %v2020_v36 = vpop.eup %2019 }
 0x1ae   :  { %v207_v37 = vadd.f32 1.0, %v2020_v36 }
 0x1b0   :  { %2021 = vrcp.f32 %v207_v37 }
 0x1bd   :  { %v2022_v38 = vpop.eup %2021 }
 0x21e   :  { %v212_v33 = vpop.permute.xlu0 %211 }
 0x21f   :  { %v214_v34 = vsub.f32 %v2018_v32, %v212_v33 }
 0x221   :  { %216 = vrot.lane.b32.xlu0 %v214_v34, %s2104_s10 }
 0x293   :  { %v217_v39 = vpop.permute.xlu0 %216 }
 0x294   :  { %v219_v40 = vmul.f32 %v2022_v38, %v217_v39  ;;  %v1449_v39 = vld [vmem:[%s2678_s0 + $0x18] sm:$0xff] }
 0x296   :  { %221 = vrot.lane.b32.xlu1 %v219_v40, %s2105_s4 }
 0x308   :  { %v222_v41 = vpop.permute.xlu1 %221 }
 0x309   :  { %v224_v42 = vadd.f32 %v2018_v32, %v222_v41 }
 0x30b   :  { %225 = vst.msk [vmem:[#allocation3] sm:$0xff] %vm26_vm0, %v224_v42  ;;  %1695 = vmatmul.mubr.msk.f32.vlgmr.msra.gmra.mxu0 %vm26_vm0, %v224_v42 }
 0x30c   :  { %1698 = vmatpush3.msra.mxu0 %v2182_v6  ;;  %1729 = vmatprep.mubr.msk.f32.mxu0 %vm2103_vm1, %v2102_v1 }
 0x30d   :  { %1699 = vmatprep.subr.mxu0 %v2102_v1 }
 0x30e   :  { %1700 = vmatpush3.msra.mxu0 %v2191_v8 }
 0x30f   :  { %1701 = vmatprep.subr.mxu0 %v2102_v1 }
 0x310   :  { %1702 = vmatpush3.msra.mxu0 %v2202_v9 }
 0x311   :  { %1703 = vmatprep.subr.mxu0 %v2102_v1 }
 0x312   :  { %1704 = vmatpush3.msra.mxu0 %v2210_v10 }
 0x313   :  { %1705 = vmatprep.subr.mxu0 %v2102_v1 }
 0x314   :  { %1706 = vmatpush3.msra.mxu0 %v2217_v11 }
 0x315   :  { %1707 = vmatprep.subr.mxu0 %v2102_v1 }
 0x316   :  { %1708 = vmatpush3.msra.mxu0 %v2224_v12 }
 0x317   :  { %1709 = vmatprep.subr.mxu0 %v2102_v1 }
 0x318   :  { %1710 = vmatpush3.msra.mxu0 %v2231_v13 }
 0x319   :  { %1711 = vmatprep.subr.mxu0 %v2102_v1 }
 0x31a   :  { %1712 = vmatpush3.msra.mxu0 %v2240_v14 }
 0x31b   :  { %1713 = vmatprep.subr.mxu0 %v2102_v1 }
 0x31c   :  { %1714 = vmatpush3.msra.mxu0 %v2247_v15 }
 0x31d   :  { %1715 = vmatprep.subr.mxu0 %v2102_v1 }
 0x31e   :  { %1716 = vmatpush3.msra.mxu0 %v2254_v16 }
 0x31f   :  { %1717 = vmatprep.subr.mxu0 %v2102_v1 }
 0x320   :  { %1718 = vmatpush3.msra.mxu0 %v2259_v17 }
 0x321   :  { %1719 = vmatprep.subr.mxu0 %v2102_v1 }
 0x322   :  { %1720 = vmatpush3.msra.mxu0 %v2266_v18 }
 0x323   :  { %1721 = vmatprep.subr.mxu0 %v2102_v1 }
 0x324   :  { %1722 = vmatpush3.msra.mxu0 %v2273_v19 }
 0x325   :  { %1723 = vmatprep.subr.mxu0 %v2102_v1 }
 0x326   :  { %1724 = vmatpush3.msra.mxu0 %v2280_v20 }
 0x327   :  { %1725 = vmatprep.subr.mxu0 %v2102_v1 }
 0x328   :  { %1726 = vmatpush3.msra.mxu0 %v2287_v21 }
 0x329   :  { %1727 = vmatprep.subr.mxu0 %v2102_v1 }
 0x32a   :  { %1728 = vmatpush3.msra.mxu0 %v2294_v22 }
 0x32b   :  { %1778 = vmatprep.subr.mxu0 %v2102_v1 }
 0x3cb   :  { %v297_v44 = vpop.f32.mrf.mxu0 }
 0x3cc   :  { %v301_v45 = vadd.f32 %v1443_v43, %v297_v44 }
 0x3cd   :  { %v1696_v46 = vpop.f32.mrf.mxu0 }
 0x3ce   :  { %2023 = vtanh.f32 %v301_v45 }
 0x3db   :  { %v2024_v47 = vpop.eup %2023 }
 0x3dc   :  { %1730 = vmatmul.mubr.f32.vlgmr.msra.gmra.mxu0 %v2024_v47 }
 0x3dd   :  { %1779 = vmatpush3.msra.mxu0 %v2142_v0  ;;  %1786 = vmatprep.mubr.msk.f32.mxu0 %vm2103_vm1, %v2102_v1 }
 0x3de   :  { %1780 = vmatprep.subr.mxu0 %v2102_v1 }
 0x3df   :  { %1781 = vmatpush3.msra.mxu0 %v2148_v2 }
 0x3e0   :  { %1782 = vmatprep.subr.mxu0 %v2102_v1 }
 0x3e1   :  { %1783 = vmatpush3.msra.mxu0 %v2162_v4 }
 0x3e2   :  { %1784 = vmatprep.subr.mxu0 %v2102_v1 }
 0x3e3   :  { %1785 = vmatpush3.msra.mxu0 %v2171_v5 }
 0x3e4   :  { %1789 = vmatprep.subr.mxu0 %v2102_v1 }
 0x49c   :  { %v369_v48 = vpop.f32.mrf.mxu0 }
 0x49d   :  { %v370_v49 = vadd.f32 %v2316_v28, %v369_v48 }
 0x49e   :  { %v1731_v50 = vpop.f32.mrf.mxu0 }
 0x49f   :  { %2025 = vtanh.f32 %v370_v49  ;;  %v1445_v54 = vmul.f32 -1.442695, %v370_v49 }
 0x4a1   :  { %2027 = vpow2.f32 %v1445_v54 }
 0x4ac   :  { %v2026_v51 = vpop.eup %2025 }
 0x4ad   :  { %381 = vrot.lane.b32.xlu1 %v2026_v51, %s2104_s10 }
 0x4ae   :  { %v2028_v55 = vpop.eup %2027 }
 0x4af   :  { %v377_v56 = vadd.f32 1.0, %v2028_v55 }
 0x4b1   :  { %2029 = vrcp.f32 %v377_v56 }
 0x4be   :  { %v2030_v57 = vpop.eup %2029 }
 0x51f   :  { %v382_v52 = vpop.permute.xlu1 %381 }
 0x520   :  { %v384_v53 = vsub.f32 %v2026_v51, %v382_v52 }
 0x522   :  { %386 = vrot.lane.b32.xlu0 %v384_v53, %s2104_s10 }
 0x594   :  { %v387_v58 = vpop.permute.xlu0 %386 }
 0x595   :  { %v389_v59 = vmul.f32 %v2030_v57, %v387_v58  ;;  %v1452_v58 = vld [vmem:[%s2678_s0 + $0x20] sm:$0xff] }
 0x597   :  { %391 = vrot.lane.b32.xlu1 %v389_v59, %s2105_s4 }
 0x609   :  { %v392_v60 = vpop.permute.xlu1 %391 }
 0x60a   :  { %v394_v61 = vadd.f32 %v2026_v51, %v392_v60 }
 0x60c   :  { %396 = vst.msk [vmem:[#allocation3 + $0x8] sm:$0xff] %vm26_vm0, %v394_v61  ;;  %1741 = vmatmul.mubr.msk.f32.vlgmr.msra.gmra.mxu1 %vm26_vm0, %v394_v61 }
 0x60d   :  { %1744 = vmatpush3.msra.mxu1 %v2182_v6  ;;  %1775 = vmatprep.mubr.msk.f32.mxu1 %vm2103_vm1, %v2102_v1 }
 0x60e   :  { %1745 = vmatprep.subr.mxu1 %v2102_v1 }
 0x60f   :  { %1746 = vmatpush3.msra.mxu1 %v2191_v8 }
 0x610   :  { %1747 = vmatprep.subr.mxu1 %v2102_v1 }
 0x611   :  { %1748 = vmatpush3.msra.mxu1 %v2202_v9 }
 0x612   :  { %1749 = vmatprep.subr.mxu1 %v2102_v1 }
 0x613   :  { %1750 = vmatpush3.msra.mxu1 %v2210_v10 }
 0x614   :  { %1751 = vmatprep.subr.mxu1 %v2102_v1 }
 0x615   :  { %1752 = vmatpush3.msra.mxu1 %v2217_v11 }
 0x616   :  { %1753 = vmatprep.subr.mxu1 %v2102_v1 }
 0x617   :  { %1754 = vmatpush3.msra.mxu1 %v2224_v12 }
 0x618   :  { %1755 = vmatprep.subr.mxu1 %v2102_v1 }
 0x619   :  { %1756 = vmatpush3.msra.mxu1 %v2231_v13 }
 0x61a   :  { %1757 = vmatprep.subr.mxu1 %v2102_v1 }
 0x61b   :  { %1758 = vmatpush3.msra.mxu1 %v2240_v14 }
 0x61c   :  { %1759 = vmatprep.subr.mxu1 %v2102_v1 }
 0x61d   :  { %1760 = vmatpush3.msra.mxu1 %v2247_v15 }
 0x61e   :  { %1761 = vmatprep.subr.mxu1 %v2102_v1 }
 0x61f   :  { %1762 = vmatpush3.msra.mxu1 %v2254_v16 }
 0x620   :  { %1763 = vmatprep.subr.mxu1 %v2102_v1 }
 0x621   :  { %1764 = vmatpush3.msra.mxu1 %v2259_v17 }
 0x622   :  { %1765 = vmatprep.subr.mxu1 %v2102_v1 }
 0x623   :  { %1766 = vmatpush3.msra.mxu1 %v2266_v18 }
 0x624   :  { %1767 = vmatprep.subr.mxu1 %v2102_v1 }
 0x625   :  { %1768 = vmatpush3.msra.mxu1 %v2273_v19 }
 0x626   :  { %1769 = vmatprep.subr.mxu1 %v2102_v1 }
 0x627   :  { %1770 = vmatpush3.msra.mxu1 %v2280_v20 }
 0x628   :  { %1771 = vmatprep.subr.mxu1 %v2102_v1 }
 0x629   :  { %1772 = vmatpush3.msra.mxu1 %v2287_v21 }
 0x62a   :  { %1773 = vmatprep.subr.mxu1 %v2102_v1 }
 0x62b   :  { %1774 = vmatpush3.msra.mxu1 %v2294_v22 }
 0x62c   :  { %1824 = vmatprep.subr.mxu1 %v2102_v1 }
 0x6cc   :  { %v468_v63 = vpop.f32.mrf.mxu1 }
 0x6cd   :  { %v472_v3 = vadd.f32 %v1446_v62, %v468_v63 }
 0x6ce   :  { %v1742_v7 = vpop.f32.mrf.mxu1 }
 0x6cf   :  { %2031 = vtanh.f32 %v472_v3 }
 0x6dc   :  { %v2032_v23 = vpop.eup %2031 }
 0x6dd   :  { %1776 = vmatmul.mubr.f32.vlgmr.msra.gmra.mxu1 %v2032_v23 }
 0x6de   :  { %1825 = vmatpush3.msra.mxu1 %v2142_v0  ;;  %1832 = vmatprep.mubr.msk.f32.mxu1 %vm2103_vm1, %v2102_v1 }
 0x6df   :  { %1826 = vmatprep.subr.mxu1 %v2102_v1 }
 0x6e0   :  { %1827 = vmatpush3.msra.mxu1 %v2148_v2 }
 0x6e1   :  { %1828 = vmatprep.subr.mxu1 %v2102_v1 }
 0x6e2   :  { %1829 = vmatpush3.msra.mxu1 %v2162_v4 }
 0x6e3   :  { %1830 = vmatprep.subr.mxu1 %v2102_v1 }
 0x6e4   :  { %1831 = vmatpush3.msra.mxu1 %v2171_v5 }
 0x6e5   :  { %1835 = vmatprep.subr.mxu1 %v2102_v1 }
 0x79d   :  { %v540_v24 = vpop.f32.mrf.mxu1 }
 0x79e   :  { %v541_v25 = vadd.f32 %v2316_v28, %v540_v24 }
 0x79f   :  { %v1777_v26 = vpop.f32.mrf.mxu1 }
 0x7a0   :  { %2033 = vtanh.f32 %v541_v25  ;;  %v1448_v31 = vmul.f32 -1.442695, %v541_v25 }
 0x7a2   :  { %2035 = vpow2.f32 %v1448_v31 }
 0x7ad   :  { %v2034_v27 = vpop.eup %2033 }
 0x7ae   :  { %552 = vrot.lane.b32.xlu0 %v2034_v27, %s2104_s10 }
 0x7af   :  { %v2036_v32 = vpop.eup %2035 }
 0x7b0   :  { %v548_v33 = vadd.f32 1.0, %v2036_v32 }
 0x7b2   :  { %2037 = vrcp.f32 %v548_v33 }
 0x7bf   :  { %v2038_v34 = vpop.eup %2037 }
 0x820   :  { %v553_v29 = vpop.permute.xlu0 %552 }
 0x821   :  { %v555_v30 = vsub.f32 %v2034_v27, %v553_v29 }
 0x823   :  { %557 = vrot.lane.b32.xlu1 %v555_v30, %s2104_s10 }
 0x895   :  { %v558_v35 = vpop.permute.xlu1 %557 }
 0x896   :  { %v560_v36 = vmul.f32 %v2038_v34, %v558_v35  ;;  %v1455_v35 = vld [vmem:[%s2678_s0 + $0x28] sm:$0xff] }
 0x898   :  { %562 = vrot.lane.b32.xlu0 %v560_v36, %s2105_s4 }
 0x90a   :  { %v563_v37 = vpop.permute.xlu0 %562 }
 0x90b   :  { %v565_v38 = vadd.f32 %v2034_v27, %v563_v37 }
 0x90d   :  { %567 = vst.msk [vmem:[#allocation3 + $0x10] sm:$0xff] %vm26_vm0, %v565_v38  ;;  %1787 = vmatmul.mubr.msk.f32.vlgmr.msra.gmra.mxu0 %vm26_vm0, %v565_v38 }
 0x90e   :  { %1790 = vmatpush3.msra.mxu0 %v2182_v6  ;;  %1821 = vmatprep.mubr.msk.f32.mxu0 %vm2103_vm1, %v2102_v1 }
 0x90f   :  { %1791 = vmatprep.subr.mxu0 %v2102_v1 }
 0x910   :  { %1792 = vmatpush3.msra.mxu0 %v2191_v8 }
 0x911   :  { %1793 = vmatprep.subr.mxu0 %v2102_v1 }
 0x912   :  { %1794 = vmatpush3.msra.mxu0 %v2202_v9 }
 0x913   :  { %1795 = vmatprep.subr.mxu0 %v2102_v1 }
 0x914   :  { %1796 = vmatpush3.msra.mxu0 %v2210_v10 }
 0x915   :  { %1797 = vmatprep.subr.mxu0 %v2102_v1 }
 0x916   :  { %1798 = vmatpush3.msra.mxu0 %v2217_v11 }
 0x917   :  { %1799 = vmatprep.subr.mxu0 %v2102_v1 }
 0x918   :  { %1800 = vmatpush3.msra.mxu0 %v2224_v12 }
 0x919   :  { %1801 = vmatprep.subr.mxu0 %v2102_v1 }
 0x91a   :  { %1802 = vmatpush3.msra.mxu0 %v2231_v13 }
 0x91b   :  { %1803 = vmatprep.subr.mxu0 %v2102_v1 }
 0x91c   :  { %1804 = vmatpush3.msra.mxu0 %v2240_v14 }
 0x91d   :  { %1805 = vmatprep.subr.mxu0 %v2102_v1 }
 0x91e   :  { %1806 = vmatpush3.msra.mxu0 %v2247_v15 }
 0x91f   :  { %1807 = vmatprep.subr.mxu0 %v2102_v1 }
 0x920   :  { %1808 = vmatpush3.msra.mxu0 %v2254_v16 }
 0x921   :  { %1809 = vmatprep.subr.mxu0 %v2102_v1 }
 0x922   :  { %1810 = vmatpush3.msra.mxu0 %v2259_v17 }
 0x923   :  { %1811 = vmatprep.subr.mxu0 %v2102_v1 }
 0x924   :  { %1812 = vmatpush3.msra.mxu0 %v2266_v18 }
 0x925   :  { %1813 = vmatprep.subr.mxu0 %v2102_v1 }
 0x926   :  { %1814 = vmatpush3.msra.mxu0 %v2273_v19 }
 0x927   :  { %1815 = vmatprep.subr.mxu0 %v2102_v1 }
 0x928   :  { %1816 = vmatpush3.msra.mxu0 %v2280_v20 }
 0x929   :  { %1817 = vmatprep.subr.mxu0 %v2102_v1 }
 0x92a   :  { %1818 = vmatpush3.msra.mxu0 %v2287_v21 }
 0x92b   :  { %1819 = vmatprep.subr.mxu0 %v2102_v1 }
 0x92c   :  { %1820 = vmatpush3.msra.mxu0 %v2294_v22 }
 0x92d   :  { %1870 = vmatprep.subr.mxu0 %v2102_v1 }
 0x9cd   :  { %v639_v40 = vpop.f32.mrf.mxu0 }
 0x9ce   :  { %v643_v41 = vadd.f32 %v1449_v39, %v639_v40 }
 0x9cf   :  { %v1788_v42 = vpop.f32.mrf.mxu0 }
 0x9d0   :  { %2039 = vtanh.f32 %v643_v41 }
 0x9dd   :  { %v2040_v43 = vpop.eup %2039 }
 0x9de   :  { %1822 = vmatmul.mubr.f32.vlgmr.msra.gmra.mxu0 %v2040_v43 }
 0x9df   :  { %1871 = vmatpush3.msra.mxu0 %v2142_v0  ;;  %1878 = vmatprep.mubr.msk.f32.mxu0 %vm2103_vm1, %v2102_v1 }
 0x9e0   :  { %1872 = vmatprep.subr.mxu0 %v2102_v1 }
 0x9e1   :  { %1873 = vmatpush3.msra.mxu0 %v2148_v2 }
 0x9e2   :  { %1874 = vmatprep.subr.mxu0 %v2102_v1 }
 0x9e3   :  { %1875 = vmatpush3.msra.mxu0 %v2162_v4 }
 0x9e4   :  { %1876 = vmatprep.subr.mxu0 %v2102_v1 }
 0x9e5   :  { %1877 = vmatpush3.msra.mxu0 %v2171_v5 }
 0x9e6   :  { %1881 = vmatprep.subr.mxu0 %v2102_v1 }
 0xa9e   :  { %v711_v44 = vpop.f32.mrf.mxu0 }
 0xa9f   :  { %v712_v45 = vadd.f32 %v2316_v28, %v711_v44 }
 0xaa0   :  { %v1823_v46 = vpop.f32.mrf.mxu0 }
 0xaa1   :  { %2041 = vtanh.f32 %v712_v45  ;;  %v1451_v50 = vmul.f32 -1.442695, %v712_v45 }
 0xaa3   :  { %2043 = vpow2.f32 %v1451_v50 }
 0xaae   :  { %v2042_v47 = vpop.eup %2041 }
 0xaaf   :  { %723 = vrot.lane.b32.xlu1 %v2042_v47, %s2104_s10 }
 0xab0   :  { %v2044_v51 = vpop.eup %2043 }
 0xab1   :  { %v719_v52 = vadd.f32 1.0, %v2044_v51 }
 0xab3   :  { %2045 = vrcp.f32 %v719_v52 }
 0xac0   :  { %v2046_v53 = vpop.eup %2045 }
 0xb21   :  { %v724_v48 = vpop.permute.xlu1 %723 }
 0xb22   :  { %v726_v49 = vsub.f32 %v2042_v47, %v724_v48 }
 0xb24   :  { %728 = vrot.lane.b32.xlu0 %v726_v49, %s2104_s10 }
 0xb96   :  { %v729_v54 = vpop.permute.xlu0 %728 }
 0xb97   :  { %v731_v55 = vmul.f32 %v2046_v53, %v729_v54 }
 0xb99   :  { %733 = vrot.lane.b32.xlu1 %v731_v55, %s2105_s4 }
 0xc0b   :  { %v734_v56 = vpop.permute.xlu1 %733 }
 0xc0c   :  { %v736_v57 = vadd.f32 %v2042_v47, %v734_v56 }
 0xc0e   :  { %738 = vst.msk [vmem:[#allocation3 + $0x18] sm:$0xff] %vm26_vm0, %v736_v57  ;;  %1833 = vmatmul.mubr.msk.f32.vlgmr.msra.gmra.mxu1 %vm26_vm0, %v736_v57 }
 0xc0f   :  { %1836 = vmatpush3.msra.mxu1 %v2182_v6  ;;  %1867 = vmatprep.mubr.msk.f32.mxu1 %vm2103_vm1, %v2102_v1 }
 0xc10   :  { %1837 = vmatprep.subr.mxu1 %v2102_v1 }
 0xc11   :  { %1838 = vmatpush3.msra.mxu1 %v2191_v8 }
 0xc12   :  { %1839 = vmatprep.subr.mxu1 %v2102_v1 }
 0xc13   :  { %1840 = vmatpush3.msra.mxu1 %v2202_v9 }
 0xc14   :  { %1841 = vmatprep.subr.mxu1 %v2102_v1 }
 0xc15   :  { %1842 = vmatpush3.msra.mxu1 %v2210_v10 }
 0xc16   :  { %1843 = vmatprep.subr.mxu1 %v2102_v1 }
 0xc17   :  { %1844 = vmatpush3.msra.mxu1 %v2217_v11 }
 0xc18   :  { %1845 = vmatprep.subr.mxu1 %v2102_v1 }
 0xc19   :  { %1846 = vmatpush3.msra.mxu1 %v2224_v12 }
 0xc1a   :  { %1847 = vmatprep.subr.mxu1 %v2102_v1 }
 0xc1b   :  { %1848 = vmatpush3.msra.mxu1 %v2231_v13 }
 0xc1c   :  { %1849 = vmatprep.subr.mxu1 %v2102_v1 }
 0xc1d   :  { %1850 = vmatpush3.msra.mxu1 %v2240_v14 }
 0xc1e   :  { %1851 = vmatprep.subr.mxu1 %v2102_v1 }
 0xc1f   :  { %1852 = vmatpush3.msra.mxu1 %v2247_v15 }
 0xc20   :  { %1853 = vmatprep.subr.mxu1 %v2102_v1 }
 0xc21   :  { %1854 = vmatpush3.msra.mxu1 %v2254_v16 }
 0xc22   :  { %1855 = vmatprep.subr.mxu1 %v2102_v1 }
 0xc23   :  { %1856 = vmatpush3.msra.mxu1 %v2259_v17 }
 0xc24   :  { %1857 = vmatprep.subr.mxu1 %v2102_v1 }
 0xc25   :  { %1858 = vmatpush3.msra.mxu1 %v2266_v18 }
 0xc26   :  { %1859 = vmatprep.subr.mxu1 %v2102_v1 }
 0xc27   :  { %1860 = vmatpush3.msra.mxu1 %v2273_v19 }
 0xc28   :  { %1861 = vmatprep.subr.mxu1 %v2102_v1 }
 0xc29   :  { %1862 = vmatpush3.msra.mxu1 %v2280_v20 }
 0xc2a   :  { %1863 = vmatprep.subr.mxu1 %v2102_v1 }
 0xc2b   :  { %1864 = vmatpush3.msra.mxu1 %v2287_v21 }
 0xc2c   :  { %1865 = vmatprep.subr.mxu1 %v2102_v1 }
 0xc2d   :  { %1866 = vmatpush3.msra.mxu1 %v2294_v22 }
 0xc2e   :  { %1916 = vmatprep.subr.mxu1 %v2102_v1 }
 0xcce   :  { %v810_v59 = vpop.f32.mrf.mxu1 }
 0xccf   :  { %v814_v60 = vadd.f32 %v1452_v58, %v810_v59 }
 0xcd0   :  { %v1834_v61 = vpop.f32.mrf.mxu1 }
 0xcd1   :  { %2047 = vtanh.f32 %v814_v60 }
 0xcde   :  { %v2048_v62 = vpop.eup %2047 }
 0xcdf   :  { %1868 = vmatmul.mubr.f32.vlgmr.msra.gmra.mxu1 %v2048_v62 }
 0xce0   :  { %1917 = vmatpush3.msra.mxu1 %v2142_v0  ;;  %1924 = vmatprep.mubr.msk.f32.mxu1 %vm2103_vm1, %v2102_v1 }
 0xce1   :  { %1918 = vmatprep.subr.mxu1 %v2102_v1 }
 0xce2   :  { %1919 = vmatpush3.msra.mxu1 %v2148_v2 }
 0xce3   :  { %1920 = vmatprep.subr.mxu1 %v2102_v1 }
 0xce4   :  { %1921 = vmatpush3.msra.mxu1 %v2162_v4 }
 0xce5   :  { %1922 = vmatprep.subr.mxu1 %v2102_v1 }
 0xce6   :  { %1923 = vmatpush3.msra.mxu1 %v2171_v5 }
 0xce7   :  { %1927 = vmatprep.subr.mxu1 %v2102_v1 }
 0xd9f   :  { %v882_v63 = vpop.f32.mrf.mxu1 }
 0xda0   :  { %v883_v3 = vadd.f32 %v2316_v28, %v882_v63 }
 0xda1   :  { %v1869_v7 = vpop.f32.mrf.mxu1 }
 0xda2   :  { %2049 = vtanh.f32 %v883_v3  ;;  %v1454_v26 = vmul.f32 -1.442695, %v883_v3 }
 0xda4   :  { %2051 = vpow2.f32 %v1454_v26 }
 0xdaf   :  { %v2050_v23 = vpop.eup %2049 }
 0xdb0   :  { %894 = vrot.lane.b32.xlu0 %v2050_v23, %s2104_s10 }
 0xdb1   :  { %v2052_v27 = vpop.eup %2051 }
 0xdb2   :  { %v890_v29 = vadd.f32 1.0, %v2052_v27 }
 0xdb4   :  { %2053 = vrcp.f32 %v890_v29 }
 0xdc1   :  { %v2054_v30 = vpop.eup %2053 }
 0xe22   :  { %v895_v24 = vpop.permute.xlu0 %894 }
 0xe23   :  { %v897_v25 = vsub.f32 %v2050_v23, %v895_v24 }
 0xe25   :  { %899 = vrot.lane.b32.xlu1 %v897_v25, %s2104_s10  ;;  %v2079_v25 = vld [vmem:[%s2681_s3 + $0x78] sm:$0xff] }
 0xe97   :  { %v900_v31 = vpop.permute.xlu1 %899 }
 0xe98   :  { %v902_v32 = vmul.f32 %v2054_v30, %v900_v31 }
 0xe9a   :  { %904 = vrot.lane.b32.xlu0 %v902_v32, %s2105_s4 }
 0xf0c   :  { %v905_v33 = vpop.permute.xlu0 %904 }
 0xf0d   :  { %v907_v34 = vadd.f32 %v2050_v23, %v905_v33 }
 0xf0f   :  { %909 = vst.msk [vmem:[#allocation3 + $0x20] sm:$0xff] %vm26_vm0, %v907_v34  ;;  %1879 = vmatmul.mubr.msk.f32.vlgmr.msra.gmra.mxu0 %vm26_vm0, %v907_v34 }
 0xf10   :  { %1882 = vmatpush3.msra.mxu0 %v2182_v6  ;;  %1913 = vmatprep.mubr.msk.f32.mxu0 %vm2103_vm1, %v2102_v1 }
 0xf11   :  { %1883 = vmatprep.subr.mxu0 %v2102_v1 }
 0xf12   :  { %1884 = vmatpush3.msra.mxu0 %v2191_v8 }
 0xf13   :  { %1885 = vmatprep.subr.mxu0 %v2102_v1 }
 0xf14   :  { %1886 = vmatpush3.msra.mxu0 %v2202_v9 }
 0xf15   :  { %1887 = vmatprep.subr.mxu0 %v2102_v1 }
 0xf16   :  { %1888 = vmatpush3.msra.mxu0 %v2210_v10 }
 0xf17   :  { %1889 = vmatprep.subr.mxu0 %v2102_v1 }
 0xf18   :  { %1890 = vmatpush3.msra.mxu0 %v2217_v11 }
 0xf19   :  { %1891 = vmatprep.subr.mxu0 %v2102_v1 }
 0xf1a   :  { %1892 = vmatpush3.msra.mxu0 %v2224_v12 }
 0xf1b   :  { %1893 = vmatprep.subr.mxu0 %v2102_v1 }
 0xf1c   :  { %1894 = vmatpush3.msra.mxu0 %v2231_v13 }
 0xf1d   :  { %1895 = vmatprep.subr.mxu0 %v2102_v1 }
 0xf1e   :  { %1896 = vmatpush3.msra.mxu0 %v2240_v14 }
 0xf1f   :  { %1897 = vmatprep.subr.mxu0 %v2102_v1 }
 0xf20   :  { %1898 = vmatpush3.msra.mxu0 %v2247_v15 }
 0xf21   :  { %1899 = vmatprep.subr.mxu0 %v2102_v1 }
 0xf22   :  { %1900 = vmatpush3.msra.mxu0 %v2254_v16 }
 0xf23   :  { %1901 = vmatprep.subr.mxu0 %v2102_v1 }
 0xf24   :  { %1902 = vmatpush3.msra.mxu0 %v2259_v17 }
 0xf25   :  { %1903 = vmatprep.subr.mxu0 %v2102_v1 }
 0xf26   :  { %1904 = vmatpush3.msra.mxu0 %v2266_v18 }
 0xf27   :  { %1905 = vmatprep.subr.mxu0 %v2102_v1 }
 0xf28   :  { %1906 = vmatpush3.msra.mxu0 %v2273_v19 }
 0xf29   :  { %1907 = vmatprep.subr.mxu0 %v2102_v1 }
 0xf2a   :  { %1908 = vmatpush3.msra.mxu0 %v2280_v20 }
 0xf2b   :  { %1909 = vmatprep.subr.mxu0 %v2102_v1 }
 0xf2c   :  { %1910 = vmatpush3.msra.mxu0 %v2287_v21 }
 0xf2d   :  { %1911 = vmatprep.subr.mxu0 %v2102_v1 }
 0xf2e   :  { %1912 = vmatpush3.msra.mxu0 %v2294_v22 }
 0xf2f   :  { %1962 = vmatprep.subr.mxu0 %v2102_v1 }
 0xfcf   :  { %v981_v36 = vpop.f32.mrf.mxu0 }
 0xfd0   :  { %v985_v37 = vadd.f32 %v1455_v35, %v981_v36 }
 0xfd1   :  { %v1880_v38 = vpop.f32.mrf.mxu0 }
 0xfd2   :  { %2055 = vtanh.f32 %v985_v37 }
 0xfdf   :  { %v2056_v39 = vpop.eup %2055 }
 0xfe0   :  { %1914 = vmatmul.mubr.f32.vlgmr.msra.gmra.mxu0 %v2056_v39 }
 0xfe1   :  { %1963 = vmatpush3.msra.mxu0 %v2142_v0  ;;  %1970 = vmatprep.mubr.msk.f32.mxu0 %vm2103_vm1, %v2102_v1 }
 0xfe2   :  { %1964 = vmatprep.subr.mxu0 %v2102_v1 }
 0xfe3   :  { %1965 = vmatpush3.msra.mxu0 %v2148_v2 }
 0xfe4   :  { %1966 = vmatprep.subr.mxu0 %v2102_v1 }
 0xfe5   :  { %1967 = vmatpush3.msra.mxu0 %v2162_v4 }
 0xfe6   :  { %1968 = vmatprep.subr.mxu0 %v2102_v1 }
 0xfe7   :  { %1969 = vmatpush3.msra.mxu0 %v2171_v5 }
 0xfe8   :  { %1973 = vmatprep.subr.mxu0 %v2102_v1 }
0x10a0   :  { %v1053_v40 = vpop.f32.mrf.mxu0 }
0x10a1   :  { %v1054_v0 = vadd.f32 %v2316_v28, %v1053_v40 }
0x10a2   :  { %v1915_v41 = vpop.f32.mrf.mxu0 }
0x10a3   :  { %2057 = vtanh.f32 %v1054_v0  ;;  %v1457_v44 = vmul.f32 -1.442695, %v1054_v0 }
0x10a5   :  { %2059 = vpow2.f32 %v1457_v44 }
0x10b0   :  { %v2058_v42 = vpop.eup %2057 }
0x10b1   :  { %1065 = vrot.lane.b32.xlu1 %v2058_v42, %s2104_s10 }
0x10b2   :  { %v2060_v4 = vpop.eup %2059 }
0x10b3   :  { %v1061_v45 = vadd.f32 1.0, %v2060_v4 }
0x10b5   :  { %2061 = vrcp.f32 %v1061_v45 }
0x10c2   :  { %v2062_v5 = vpop.eup %2061 }
0x1123   :  { %v1066_v43 = vpop.permute.xlu1 %1065 }
0x1124   :  { %v1068_v2 = vsub.f32 %v2058_v42, %v1066_v43 }
0x1126   :  { %1070 = vrot.lane.b32.xlu0 %v1068_v2, %s2104_s10 }
0x1198   :  { %v1071_v46 = vpop.permute.xlu0 %1070 }
0x1199   :  { %v1073_v47 = vmul.f32 %v2062_v5, %v1071_v46 }
0x119b   :  { %1075 = vrot.lane.b32.xlu1 %v1073_v47, %s2105_s4 }
0x120d   :  { %v1076_v48 = vpop.permute.xlu1 %1075 }
0x120e   :  { %v1078_v49 = vadd.f32 %v2058_v42, %v1076_v48 }
0x1210   :  { %1080 = vst.msk [vmem:[#allocation3 + $0x28] sm:$0xff] %vm26_vm0, %v1078_v49  ;;  %1925 = vmatmul.mubr.msk.f32.vlgmr.msra.gmra.mxu1 %vm26_vm0, %v1078_v49 }
0x1211   :  { %1928 = vmatpush3.msra.mxu1 %v2182_v6  ;;  %1959 = vmatprep.mubr.msk.f32.mxu1 %vm2103_vm1, %v2102_v1  ;;  %v1458_v6 = vld [vmem:[%s2678_s0 + $0x30] sm:$0xff] }
0x1212   :  { %1929 = vmatprep.subr.mxu1 %v2102_v1 }
0x1213   :  { %1930 = vmatpush3.msra.mxu1 %v2191_v8 }
0x1214   :  { %1931 = vmatprep.subr.mxu1 %v2102_v1 }
0x1215   :  { %1932 = vmatpush3.msra.mxu1 %v2202_v9 }
0x1216   :  { %1933 = vmatprep.subr.mxu1 %v2102_v1 }
0x1217   :  { %1934 = vmatpush3.msra.mxu1 %v2210_v10 }
0x1218   :  { %1935 = vmatprep.subr.mxu1 %v2102_v1 }
0x1219   :  { %1936 = vmatpush3.msra.mxu1 %v2217_v11 }
0x121a   :  { %1937 = vmatprep.subr.mxu1 %v2102_v1 }
0x121b   :  { %1938 = vmatpush3.msra.mxu1 %v2224_v12 }
0x121c   :  { %1939 = vmatprep.subr.mxu1 %v2102_v1 }
0x121d   :  { %1940 = vmatpush3.msra.mxu1 %v2231_v13 }
0x121e   :  { %1941 = vmatprep.subr.mxu1 %v2102_v1 }
0x121f   :  { %1942 = vmatpush3.msra.mxu1 %v2240_v14 }
0x1220   :  { %1943 = vmatprep.subr.mxu1 %v2102_v1 }
0x1221   :  { %1944 = vmatpush3.msra.mxu1 %v2247_v15 }
0x1222   :  { %1945 = vmatprep.subr.mxu1 %v2102_v1 }
0x1223   :  { %1946 = vmatpush3.msra.mxu1 %v2254_v16 }
0x1224   :  { %1947 = vmatprep.subr.mxu1 %v2102_v1 }
0x1225   :  { %1948 = vmatpush3.msra.mxu1 %v2259_v17 }
0x1226   :  { %1949 = vmatprep.subr.mxu1 %v2102_v1 }
0x1227   :  { %1950 = vmatpush3.msra.mxu1 %v2266_v18 }
0x1228   :  { %1951 = vmatprep.subr.mxu1 %v2102_v1 }
0x1229   :  { %1952 = vmatpush3.msra.mxu1 %v2273_v19 }
0x122a   :  { %1953 = vmatprep.subr.mxu1 %v2102_v1 }
0x122b   :  { %1954 = vmatpush3.msra.mxu1 %v2280_v20 }
0x122c   :  { %1955 = vmatprep.subr.mxu1 %v2102_v1 }
0x122d   :  { %1956 = vmatpush3.msra.mxu1 %v2287_v21 }
0x122e   :  { %1957 = vmatprep.subr.mxu1 %v2102_v1 }
0x122f   :  { %1958 = vmatpush3.msra.mxu1 %v2294_v22 }
0x12d0   :  { %v1152_v50 = vpop.f32.mrf.mxu1 }
0x12d1   :  { %v1156_v51 = vadd.f32 %v1458_v6, %v1152_v50 }
0x12d2   :  { %v1926_v52 = vpop.f32.mrf.mxu1 }
0x12d3   :  { %2063 = vtanh.f32 %v1156_v51 }
0x12e0   :  { %v2064_v53 = vpop.eup %2063 }
0x12e1   :  { %1960 = vmatmul.mubr.f32.vlgmr.msra.gmra.mxu1 %v2064_v53 }
0x13a1   :  { %v1224_v54 = vpop.f32.mrf.mxu1 }
0x13a2   :  { %v1225_v55 = vadd.f32 %v2316_v28, %v1224_v54 }
0x13a3   :  { %v1961_v56 = vpop.f32.mrf.mxu1 }
0x13a4   :  { %2065 = vtanh.f32 %v1225_v55  ;;  %v1460_v60 = vmul.f32 -1.442695, %v1225_v55 }
0x13a6   :  { %2067 = vpow2.f32 %v1460_v60 }
0x13b1   :  { %v2066_v57 = vpop.eup %2065 }
0x13b2   :  { %1236 = vrot.lane.b32.xlu0 %v2066_v57, %s2104_s10 }
0x13b3   :  { %v2068_v61 = vpop.eup %2067 }
0x13b4   :  { %v1232_v62 = vadd.f32 1.0, %v2068_v61 }
0x13b6   :  { %2069 = vrcp.f32 %v1232_v62 }
0x13c3   :  { %v2070_v63 = vpop.eup %2069 }
0x1424   :  { %v1237_v58 = vpop.permute.xlu0 %1236 }
0x1425   :  { %v1239_v59 = vsub.f32 %v2066_v57, %v1237_v58 }
0x1427   :  { %1241 = vrot.lane.b32.xlu1 %v1239_v59, %s2104_s10 }
0x1499   :  { %v1242_v3 = vpop.permute.xlu1 %1241 }
0x149a   :  { %v1244_v7 = vmul.f32 %v2070_v63, %v1242_v3 }
0x149c   :  { %1246 = vrot.lane.b32.xlu0 %v1244_v7, %s2105_s4 }
0x150e   :  { %v1247_v23 = vpop.permute.xlu0 %1246 }
0x150f   :  { %v1249_v24 = vadd.f32 %v2066_v57, %v1247_v23 }
0x1511   :  { %1251 = vst.msk [vmem:[#allocation3 + $0x30] sm:$0xff] %vm26_vm0, %v1249_v24  ;;  %1971 = vmatmul.mubr.msk.f32.vlgmr.msra.gmra.mxu0 %vm26_vm0, %v1249_v24 }
0x1512   :  { %1974 = vmatpush3.msra.mxu0 %v2079_v25  ;;  %2005 = vmatprep.mubr.msk.f32.mxu0 %vm2103_vm1, %v2102_v1 }
0x1513   :  { %1975 = vmatprep.subr.mxu0 %v2102_v1 }
0x1514   :  { %1976 = vmatpush3.msra.mxu0 %v2191_v8  ;;  %v1461_v8 = vld [vmem:[%s2678_s0 + $0x38] sm:$0xff]  ;;  %s2106_s0 = smov [#allocation3]  }
0x1515   :  { %1977 = vmatprep.subr.mxu0 %v2102_v1  ;;  %s1429_s1 = sshll.u32 %s2106_s0, 4  ;;  %s1430_s1 = int_to_ptr.vmem [resolvable:$true] %s1429_s1 }
0x1516   :  { %1978 = vmatpush3.msra.mxu0 %v2202_v9  ;;  %s2080_s26 = scalar_lea.vmem %s1430_s1, 1024  ;;  %p2085_p1 = scmp.lt.s32.totalorder %s1430_s1, %s1430_s1 }
0x1517   :  { %1979 = vmatprep.subr.mxu0 %v2102_v1  ;;  %p2081_p0 = scmp.ne.s32.totalorder %s1430_s1, %s2080_s26  ;;  %p2086_p2 = scmp.lt.s32.totalorder %s2080_s26, %s2080_s26 }
0x1518   :  { %1980 = vmatpush3.msra.mxu0 %v2210_v10 }
0x1519   :  { %1981 = vmatprep.subr.mxu0 %v2102_v1  ;;  %p2087_p3 = por %p2086_p2, %p2085_p1 }
0x151a   :  { %1982 = vmatpush3.msra.mxu0 %v2217_v11 }
0x151b   :  { %1983 = vmatprep.subr.mxu0 %v2102_v1  ;;  %p2088_p4 = pnand %p2087_p3, %p2081_p0 }
0x151c   :  { %1984 = vmatpush3.msra.mxu0 %v2224_v12 }
0x151d   :  { %1985 = vmatprep.subr.mxu0 %v2102_v1 }
0x151e   :  { %1986 = vmatpush3.msra.mxu0 %v2231_v13 }
0x151f   :  { %1987 = vmatprep.subr.mxu0 %v2102_v1 }
0x1520   :  { %1988 = vmatpush3.msra.mxu0 %v2240_v14 }
0x1521   :  { %1989 = vmatprep.subr.mxu0 %v2102_v1 }
0x1522   :  { %1990 = vmatpush3.msra.mxu0 %v2247_v15 }
0x1523   :  { %1991 = vmatprep.subr.mxu0 %v2102_v1 }
0x1524   :  { %1992 = vmatpush3.msra.mxu0 %v2254_v16 }
0x1525   :  { %1993 = vmatprep.subr.mxu0 %v2102_v1 }
0x1526   :  { %1994 = vmatpush3.msra.mxu0 %v2259_v17 }
0x1527   :  { %1995 = vmatprep.subr.mxu0 %v2102_v1 }
0x1528   :  { %1996 = vmatpush3.msra.mxu0 %v2266_v18 }
0x1529   :  { %1997 = vmatprep.subr.mxu0 %v2102_v1 }
0x152a   :  { %1998 = vmatpush3.msra.mxu0 %v2273_v19 }
0x152b   :  { %1999 = vmatprep.subr.mxu0 %v2102_v1 }
0x152c   :  { %2000 = vmatpush3.msra.mxu0 %v2280_v20 }
0x152d   :  { %2001 = vmatprep.subr.mxu0 %v2102_v1 }
0x152e   :  { %2002 = vmatpush3.msra.mxu0 %v2287_v21 }
0x152f   :  { %2003 = vmatprep.subr.mxu0 %v2102_v1 }
0x1530   :  { %2004 = vmatpush3.msra.mxu0 %v2294_v22 }
0x15d1   :  { %v1323_v9 = vpop.f32.mrf.mxu0 }
0x15d2   :  { %v1327_v10 = vadd.f32 %v1461_v8, %v1323_v9 }
0x15d3   :  { %v1972_v11 = vpop.f32.mrf.mxu0 }
0x15d4   :  { %2071 = vtanh.f32 %v1327_v10 }
0x15e1   :  { %v2072_v12 = vpop.eup %2071 }
0x15e2   :  { %2006 = vmatmul.mubr.f32.vlgmr.msra.gmra.mxu0 %v2072_v12 }
0x16a2   :  { %v1395_v13 = vpop.f32.mrf.mxu0 }
0x16a3   :  { %v1396_v14 = vadd.f32 %v2316_v28, %v1395_v13 }
0x16a4   :  { %v2007_v15 = vpop.f32.mrf.mxu0 }
0x16a5   :  { %2073 = vtanh.f32 %v1396_v14  ;;  %v1463_v18 = vmul.f32 -1.442695, %v1396_v14 }
0x16a7   :  { %2075 = vpow2.f32 %v1463_v18 }
0x16b2   :  { %v2074_v16 = vpop.eup %2073 }
0x16b3   :  { %1407 = vrot.lane.b32.xlu1 %v2074_v16, %s2104_s10 }
0x16b4   :  { %v2076_v19 = vpop.eup %2075 }
0x16b5   :  { %v1403_v20 = vadd.f32 1.0, %v2076_v19 }
0x16b7   :  { %2077 = vrcp.f32 %v1403_v20 }
0x16c4   :  { %v2078_v21 = vpop.eup %2077 }
0x1725   :  { %v1408_v1 = vpop.permute.xlu1 %1407 }
0x1726   :  { %v1410_v17 = vsub.f32 %v2074_v16, %v1408_v1 }
0x1728   :  { %1412 = vrot.lane.b32.xlu0 %v1410_v17, %s2104_s10 }
0x179a   :  { %v1413_v22 = vpop.permute.xlu0 %1412 }
0x179b   :  { %v1415_v26 = vmul.f32 %v2078_v21, %v1413_v22 }
0x179d   :  { %1417 = vrot.lane.b32.xlu1 %v1415_v26, %s2105_s4 }
0x180f   :  { %v1418_v28 = vpop.permute.xlu1 %1417 }
0x1810   :  { %v1420_v27 = vadd.f32 %v2074_v16, %v1418_v28 }
0x1812   :  { %1422 = vst.msk [vmem:[#allocation3 + $0x38] sm:$0xff] %vm26_vm0, %v1420_v27  ;;  %1423 = vst.msk [vmem:[#allocation2] sm:$0xff] %vm26_vm0, %v1420_v27 }
0x1813   :  { %2091 = shalt.err (!%p2088_p4)
}
0x1814   :  { %s2107_s27 = smov 128   ;;  %s2108_s28 = smov 8  }
0x1815   :  { %1435 = dma.vmem_to_hbm [thread:$0]  %s1430_s1, 1024, %s2683_s5, [#allocation4], %s2107_s27, %s2107_s27, %s2108_s28  }
0x1816   :  { %2100 = dma.done.wait [#allocation4], 1024  }
0x1817   :  { %2101 = vsyncadd [#allocation4], 4294966272 }
0x1818   :  { %1439 = vsyncpa [#allocation4], 1 }

</bundles_post_ra>
